<compile_context>
chip_gen: v6e
topology: v6e:2x2x1
jax: 0.10.0
libtpu: 0.0.40
codegen_flags: <defaults>
</compile_context>

<pallas_src>
import jax
import jax.numpy as jnp
from jax import lax
from jax.experimental import pallas as pl
from jax.experimental.pallas import tpu as pltpu


def _round_up(x, m):
    return (x + m - 1) // m * m


def _tpu_generation():
    """Best-effort TPU generation from the device kind string (5, 6 or 7)."""
    try:
        kind = jax.devices()[0].device_kind.lower()
    except Exception:
        kind = ""
    if "v7" in kind or "tpu7" in kind:
        return 7
    if "v6" in kind:
        return 6
    if "v5" in kind:
        return 5
    return 6


def _recurrence(gx_sc, whh_ref, h_sc, c_sc, Tc, Hp, store_h):
    """Sequential LSTM recurrence over one time chunk.

    Only the (Bb,Hp)x(Hp,4Hp) recurrent matmul + gate nonlinearities live in
    this loop; everything else is hoisted to per-chunk work.

    NOTE: h is rounded to bf16 for the MXU each step (f32 state is kept); at
    very long T consider an f32 recurrent matmul for tighter accumulation.
    """
    def step(t, carry):
        gates = gx_sc[t] + jnp.dot(
            h_sc[...].astype(jnp.bfloat16), whh_ref[...],
            preferred_element_type=jnp.float32)                    # (Bb, 4Hp) f32
        i_g = jax.nn.sigmoid(gates[:, 0 * Hp:1 * Hp])
        f_g = jax.nn.sigmoid(gates[:, 1 * Hp:2 * Hp])
        g_g = jnp.tanh(gates[:, 2 * Hp:3 * Hp])
        o_g = jax.nn.sigmoid(gates[:, 3 * Hp:4 * Hp])
        c_new = f_g * c_sc[...] + i_g * g_g
        h_new = o_g * jnp.tanh(c_new)
        c_sc[...] = c_new
        h_sc[...] = h_new
        store_h(t, h_new)
        return carry

    # Unrolled -> LLO can overlap EUP sigmoid/tanh with the MXU/VPU work.
    lax.fori_loop(0, Tc, step, 0, unroll=True if Tc <= 16 else 8)

    # TODO(synk): advanced follow-up -- keep W_hh MXU-weight-stationary across
    # the unrolled steps via pltpu.matmul_push_rhs/matmul_acc_lhs/matmul_pop
    # (MRF on v5e/v6e vs MRB on v7x changes the pop pattern), and single-buffer
    # the resident weight blocks via pipeline_mode=pl.Buffered(1).


def lstm_fused_kernel(emb_ref, wih_ref, bias_ref, whh_ref, wfc_ref, bfc_ref,
                      out_ref, h_sc, c_sc, gx_sc, hall_sc):
    """One (batch-block, time-chunk) grid step: LSTM recurrence + fused FC.

    emb_ref : (Tc, Bb, Ep)   bf16  padded token embeddings (streamed)
    wih_ref : (Ep, 4*Hp)     bf16  W_ih^T, gate-padded (resident)
    bias_ref: (1, 4*Hp)      f32   b_ih + b_hh, gate-padded
    whh_ref : (Hp, 4*Hp)     bf16  W_hh^T, gate-padded (resident)
    wfc_ref : (Hp, Cp)       bf16  W_fc^T (resident)
    bfc_ref : (1, Cp)        f32   b_fc
    out_ref : (Tc, Bb, Cp)   bf16  logits chunk
    h_sc/c_sc : (Bb, Hp)     f32   recurrent state, persists across time chunks
    gx_sc   : (Tc, Bb, 4*Hp) f32   per-chunk input-projection pre-activations
    hall_sc : (Tc, Bb, Hp)   bf16  per-chunk hidden states (fed to the FC matmul)
    """
    Tc, Bb, Ep = emb_ref.shape
    Hp = h_sc.shape[1]

    @pl.when(pl.program_id(1) == 0)        # new batch block -> reset state
    def _():
        h_sc[...] = jnp.zeros_like(h_sc)
        c_sc[...] = jnp.zeros_like(c_sc)

    # Input projection for the whole chunk: one big lane-dense MXU matmul.
    gx = jnp.dot(emb_ref[...].reshape(Tc * Bb, Ep), wih_ref[...],
                 preferred_element_type=jnp.float32) + bias_ref[...]
    gx_sc[...] = gx.reshape(Tc, Bb, 4 * Hp)

    def store_h(t, h_new):
        hall_sc[t] = h_new.astype(hall_sc.dtype)

    _recurrence(gx_sc, whh_ref, h_sc, c_sc, Tc, Hp, store_h)

    # One large lane-dense FC matmul for the whole chunk (hoisted out of loop).
    logits = jnp.dot(hall_sc[...].reshape(Tc * Bb, Hp), wfc_ref[...],
                     preferred_element_type=jnp.float32) + bfc_ref[...]
    out_ref[...] = logits.astype(out_ref.dtype).reshape(Tc, Bb, -1)


def lstm_hidden_kernel(emb_ref, wih_ref, bias_ref, whh_ref, out_ref,
                       h_sc, c_sc, gx_sc):
    """Same recurrence, but emits bf16 hidden states only; the FC runs in XLA.
    Used when Cp >> Hp, where a fused logits block would dominate VMEM/DMA."""
    Tc, Bb, Ep = emb_ref.shape
    Hp = h_sc.shape[1]

    @pl.when(pl.program_id(1) == 0)
    def _():
        h_sc[...] = jnp.zeros_like(h_sc)
        c_sc[...] = jnp.zeros_like(c_sc)

    gx = jnp.dot(emb_ref[...].reshape(Tc * Bb, Ep), wih_ref[...],
                 preferred_element_type=jnp.float32) + bias_ref[...]
    gx_sc[...] = gx.reshape(Tc, Bb, 4 * Hp)

    def store_h(t, h_new):
        out_ref[t] = h_new.astype(out_ref.dtype)

    _recurrence(gx_sc, whh_ref, h_sc, c_sc, Tc, Hp, store_h)


def lstm_model_forward(tokens, params):
    """tokens: (B, T) int32 -> logits (B, T, C) f32; matches LSTMModel.forward."""
    B, T = tokens.shape
    V, E = params["embedding"].shape
    H = params["w_hh"].shape[1]                          # w_hh: (4H, H)
    C = params["fc_w"].shape[0]
    f32, bf16 = jnp.float32, jnp.bfloat16

    # ---- generation-aware sizing -------------------------------------------
    gen = _tpu_generation()
    num_tc = 2 if gen >= 7 else 1                        # TensorCores per chip
    vmem_phys = (64 << 20) if gen >= 7 else (128 << 20)
    vmem_budget = int(0.75 * vmem_phys)

    Hp = _round_up(H, 128)                               # per-gate lane padding
    Ep = _round_up(E, 128)
    Cp = _round_up(C, 128)

    # Split the batch across TensorCores only where there are two of them
    # (v7x) and only when the batch is big enough to be worth it.
    nb = 2 if (num_tc == 2 and B >= 16) else 1
    Bp = _round_up(B, 8 * nb)
    Bb = Bp // nb

    # Fuse the FC only while the logits block stays comparable to the h block;
    # for vocab-sized class counts emit h and run the big GEMM in XLA.
    fuse_fc = Cp <= 4 * Hp

    def footprint(tc):
        """Conservative VMEM estimate (double-counts everything streamed/resident)."""
        blk_in = tc * Bb * Ep * 2                                  # bf16 emb block
        blk_out = tc * Bb * (Cp if fuse_fc else Hp) * 2            # bf16 out block
        wts = Ep * 4 * Hp * 2 + Hp * 4 * Hp * 2 + 4 * Hp * 4
        if fuse_fc:
            wts += Hp * Cp * 2 + Cp * 4
        scr = 2 * Bb * Hp * 4 + tc * Bb * 4 * Hp * 4               # h/c + gx chunk
        if fuse_fc:
            scr += tc * Bb * Hp * 2                                # hall (bf16)
        return 2 * (blk_in + blk_out + wts) + scr

    # Budget-driven time-chunk size (the pipelined grid axis).
    Tc = max(8, min(T, 128 if gen >= 7 else 256))
    while Tc > 8 and footprint(Tc) > vmem_budget:
        Tc //= 2
    Tpad = _round_up(T, Tc)
    nt = Tpad // Tc
    vmem_limit = int(min(max(footprint(Tc) + (16 << 20), 32 << 20), vmem_budget))

    # ---- parameter / activation prep (cheap XLA glue) ------------------------
    # Embedding table lane-padded + bf16; the gather IS the embedding lookup.
    emb_tbl = jnp.pad(params["embedding"], ((0, 0), (0, Ep - E))).astype(bf16)
    emb = emb_tbl[tokens]                                # (B, T, Ep)
    emb = jnp.transpose(emb, (1, 0, 2))                  # time-major (T, B, Ep)
    emb = jnp.pad(emb, ((0, Tpad - T), (0, Bp - B), (0, 0)))

    # W_ih^T: (E,4H) -> (Ep, 4Hp), gate-block padded so in-kernel gate slices
    # are 128-lane aligned; padded rows/cols are zero so padding is exact.
    wih = params["w_ih"].T.reshape(E, 4, H)
    wih = jnp.pad(wih, ((0, Ep - E), (0, 0), (0, Hp - H)))
    wih = wih.reshape(Ep, 4 * Hp).astype(bf16)

    bias = (params["b_ih"] + params["b_hh"]).astype(f32).reshape(4, H)
    bias = jnp.pad(bias, ((0, 0), (0, Hp - H))).reshape(1, 4 * Hp)

    whh = params["w_hh"].T.reshape(H, 4, H)
    whh = jnp.pad(whh, ((0, Hp - H), (0, 0), (0, Hp - H)))
    whh = whh.reshape(Hp, 4 * Hp).astype(bf16)

    common_in_specs = [
        pl.BlockSpec((Tc, Bb, Ep), lambda b, t: (t, b, 0)),        # embeddings
        pl.BlockSpec((Ep, 4 * Hp), lambda b, t: (0, 0)),           # W_ih (resident)
        pl.BlockSpec((1, 4 * Hp), lambda b, t: (0, 0)),            # biases
        pl.BlockSpec((Hp, 4 * Hp), lambda b, t: (0, 0)),           # W_hh (resident)
    ]
    common_scratch = [
        pltpu.VMEM((Bb, Hp), f32),                                 # h state
        pltpu.VMEM((Bb, Hp), f32),                                 # c state
        pltpu.VMEM((Tc, Bb, 4 * Hp), f32),                         # gx chunk
    ]
    cparams = pltpu.CompilerParams(
        dimension_semantics=("parallel", "arbitrary"),
        vmem_limit_bytes=vmem_limit)

    if fuse_fc:
        wfc = jnp.pad(params["fc_w"].T, ((0, Hp - H), (0, Cp - C))).astype(bf16)
        bfc = jnp.pad(params["fc_b"], (0, Cp - C)).astype(f32).reshape(1, Cp)
        out = pl.pallas_call(
            lstm_fused_kernel,
            out_shape=jax.ShapeDtypeStruct((Tpad, Bp, Cp), bf16),
            grid_spec=pltpu.PrefetchScalarGridSpec(
                num_scalar_prefetch=0,
                grid=(nb, nt),                                     # (batch, time)
                in_specs=common_in_specs + [
                    pl.BlockSpec((Hp, Cp), lambda b, t: (0, 0)),   # W_fc (resident)
                    pl.BlockSpec((1, Cp), lambda b, t: (0, 0)),    # b_fc
                ],
                out_specs=pl.BlockSpec((Tc, Bb, Cp), lambda b, t: (t, b, 0)),
                scratch_shapes=common_scratch + [pltpu.VMEM((Tc, Bb, Hp), bf16)]),
            compiler_params=cparams,
        )(emb, wih, bias, whh, wfc, bfc)
        return jnp.transpose(out[:T, :B, :C], (1, 0, 2)).astype(f32)

    # Large class count: kernel emits bf16 hidden states; FC GEMM runs in XLA.
    h_out = pl.pallas_call(
        lstm_hidden_kernel,
        out_shape=jax.ShapeDtypeStruct((Tpad, Bp, Hp), bf16),
        grid_spec=pltpu.PrefetchScalarGridSpec(
            num_scalar_prefetch=0,
            grid=(nb, nt),
            in_specs=common_in_specs,
            out_specs=pl.BlockSpec((Tc, Bb, Hp), lambda b, t: (t, b, 0)),
            scratch_shapes=common_scratch),
        compiler_params=cparams,
    )(emb, wih, bias, whh)
    h = jnp.transpose(h_out[:T, :B, :H], (1, 0, 2)).astype(f32)    # (B, T, H)
    return h @ params["fc_w"].T.astype(f32) + params["fc_b"].astype(f32)


def init_params(key, vocab_size, embed_dim, hidden_dim, num_classes):
    """Deterministic parameter init (shapes follow nn.Embedding/nn.LSTM/nn.Linear)."""
    ks = jax.random.split(key, 7)
    s = 1.0 / jnp.sqrt(hidden_dim)
    u = lambda k, shp, sc: jax.random.uniform(k, shp, jnp.float32, -sc, sc)
    return {
        "embedding": jax.random.normal(ks[0], (vocab_size, embed_dim), jnp.float32),
        "w_ih": u(ks[1], (4 * hidden_dim, embed_dim), s),
        "w_hh": u(ks[2], (4 * hidden_dim, hidden_dim), s),
        "b_ih": u(ks[3], (4 * hidden_dim,), s),
        "b_hh": u(ks[4], (4 * hidden_dim,), s),
        "fc_w": u(ks[5], (num_classes, hidden_dim), s),
        "fc_b": u(ks[6], (num_classes,), s),
    }


def reference_forward(tokens, params):
    """Pure-JAX f32 reference of the PyTorch forward, for verification."""
    H = params["w_hh"].shape[1]
    emb = params["embedding"][tokens]                    # (B, T, E)
    B = tokens.shape[0]

    def step(carry, x_t):
        h, c = carry
        gates = (x_t @ params["w_ih"].T + params["b_ih"]
                 + h @ params["w_hh"].T + params["b_hh"])
        i = jax.nn.sigmoid(gates[:, 0:H])
        f = jax.nn.sigmoid(gates[:, H:2 * H])
        g = jnp.tanh(gates[:, 2 * H:3 * H])
        o = jax.nn.sigmoid(gates[:, 3 * H:4 * H])
        c = f * c + i * g
        h = o * jnp.tanh(c)
        return (h, c), h

    h0 = jnp.zeros((B, H), jnp.float32)
    (_, _), hs = jax.lax.scan(step, (h0, h0), jnp.transpose(emb, (1, 0, 2)))
    hs = jnp.transpose(hs, (1, 0, 2))                    # (B, T, H)
    return hs @ params["fc_w"].T + params["fc_b"]


if __name__ == "__main__":
    key = jax.random.PRNGKey(0)
    k_tok, k_par, k2_tok, k2_par = jax.random.split(key, 4)

    # --- test 1: small class count -> fused in-kernel FC path ---------------
    B, T = 2, 8
    vocab_size, embed_dim, hidden_dim = 64, 16, 32
    num_classes = vocab_size                             # num_classes=None -> vocab_size
    tokens = jax.random.randint(k_tok, (B, T), 0, vocab_size, dtype=jnp.int32)
    params = init_params(k_par, vocab_size, embed_dim, hidden_dim, num_classes)
    logits = jax.block_until_ready(jax.jit(lstm_model_forward)(tokens, params))
    assert logits.shape == (B, T, num_classes)
    ref = jax.block_until_ready(reference_forward(tokens, params))
    # bf16 MXU operands (weights, embeddings, recurrent h) vs f32 reference.
    assert jnp.allclose(logits, ref, rtol=2e-2, atol=2e-2), "fused-FC path mismatch"

    # --- test 2: large class count -> h-emitting kernel + FC in XLA ---------
    B2, T2, V2, C2 = 2, 12, 32, 2048
    tokens2 = jax.random.randint(k2_tok, (B2, T2), 0, V2, dtype=jnp.int32)
    params2 = init_params(k2_par, V2, embed_dim, hidden_dim, C2)
    logits2 = jax.block_until_ready(jax.jit(lstm_model_forward)(tokens2, params2))
    assert logits2.shape == (B2, T2, C2)
    ref2 = jax.block_until_ready(reference_forward(tokens2, params2))
    assert jnp.allclose(logits2, ref2, rtol=2.5e-2, atol=2.5e-2), "h-out path mismatch"

    # TODO(synk): inter-layer LSTM dropout has no effect for num_layers=1 (no-op).
    print("KERNEL_OK")
</pallas_src>

<mosaic_0001>
module attributes {stable_mosaic.version = 11 : i64} {
  func.func @lstm_fused_kernel(%arg0: i32, %arg1: i32, %arg2: memref<8x8x128xbf16, #tpu.memory_space<vmem>>, %arg3: memref<128x512xbf16, #tpu.memory_space<vmem>>, %arg4: memref<1x512xf32, #tpu.memory_space<vmem>>, %arg5: memref<128x512xbf16, #tpu.memory_space<vmem>>, %arg6: memref<128x128xbf16, #tpu.memory_space<vmem>>, %arg7: memref<1x128xf32, #tpu.memory_space<vmem>>, %arg8: memref<8x8x128xbf16, #tpu.memory_space<vmem>>, %arg9: memref<8x128xf32, #tpu.memory_space<vmem>>, %arg10: memref<8x128xf32, #tpu.memory_space<vmem>>, %arg11: memref<8x8x512xf32, #tpu.memory_space<vmem>>, %arg12: memref<8x8x128xbf16, #tpu.memory_space<vmem>>) attributes {dimension_semantics = [#tpu.dimension_semantics<parallel>, #tpu.dimension_semantics<arbitrary>], iteration_bounds = array<i64: 1, 1>, scalar_prefetch = 0 : i64, scratch_operands = 4 : i64, tpu.core_type = #tpu.core_type<tc>, window_params = [{transform_indices = @transform_0, window_bounds = array<i64: 8, 8, 128>}, {pipeline_mode = #tpu.pipeline_mode<synchronous>, transform_indices = @transform_1, window_bounds = array<i64: 128, 512>}, {pipeline_mode = #tpu.pipeline_mode<synchronous>, transform_indices = @transform_2, window_bounds = array<i64: 1, 512>}, {pipeline_mode = #tpu.pipeline_mode<synchronous>, transform_indices = @transform_3, window_bounds = array<i64: 128, 512>}, {pipeline_mode = #tpu.pipeline_mode<synchronous>, transform_indices = @transform_4, window_bounds = array<i64: 128, 128>}, {pipeline_mode = #tpu.pipeline_mode<synchronous>, transform_indices = @transform_5, window_bounds = array<i64: 1, 128>}, {transform_indices = @transform_6, window_bounds = array<i64: 8, 8, 128>}]} {
    %c0_i32 = arith.constant 0 : i32
    %0 = arith.cmpi eq, %arg1, %c0_i32 : i32
    %1 = arith.extui %0 : i1 to i32
    %c0_i32_0 = arith.constant 0 : i32
    %2 = arith.cmpi ne, %1, %c0_i32_0 : i32
    scf.if %2 {
      %cst_166 = arith.constant 0.000000e+00 : f32
      %350 = vector.broadcast %cst_166 : f32 to vector<8x128xf32>
      %c0_167 = arith.constant 0 : index
      %c0_168 = arith.constant 0 : index
      %351 = vector.load %arg9[%c0_167, %c0_168] : memref<8x128xf32, #tpu.memory_space<vmem>>, vector<8x128xf32>
      tpu.vector_store %arg9[%c0_167, %c0_168], %350 {strides = array<i32>} : memref<8x128xf32, #tpu.memory_space<vmem>>, vector<8x128xf32>,
      %cst_169 = arith.constant 0.000000e+00 : f32
      %352 = vector.broadcast %cst_169 : f32 to vector<8x128xf32>
      %c0_170 = arith.constant 0 : index
      %c0_171 = arith.constant 0 : index
      %353 = vector.load %arg10[%c0_170, %c0_171] : memref<8x128xf32, #tpu.memory_space<vmem>>, vector<8x128xf32>
      tpu.vector_store %arg10[%c0_170, %c0_171], %352 {strides = array<i32>} : memref<8x128xf32, #tpu.memory_space<vmem>>, vector<8x128xf32>,
    } else {
    }
    %c0 = arith.constant 0 : index
    %c0_1 = arith.constant 0 : index
    %c0_2 = arith.constant 0 : index
    %3 = vector.load %arg2[%c0, %c0_1, %c0_2] : memref<8x8x128xbf16, #tpu.memory_space<vmem>>, vector<8x8x128xbf16>
    %4 = vector.shape_cast %3 : vector<8x8x128xbf16> to vector<64x128xbf16>
    %c0_3 = arith.constant 0 : index
    %c0_4 = arith.constant 0 : index
    %5 = vector.load %arg3[%c0_3, %c0_4] : memref<128x512xbf16, #tpu.memory_space<vmem>>, vector<128x512xbf16>
    %cst = arith.constant dense<0.000000e+00> : vector<64x512xf32>
    %6 = tpu.matmul %4, %5, %cst {dimension_numbers = #tpu.dot_dimension_numbers<[1], [0], [0], [1], [0, 0, 1, 1], [], []>} : vector<64x128xbf16>, vector<128x512xbf16>, vector<64x512xf32> -> vector<64x512xf32>
    %c0_5 = arith.constant 0 : index
    %c0_6 = arith.constant 0 : index
    %7 = vector.load %arg4[%c0_5, %c0_6] : memref<1x512xf32, #tpu.memory_space<vmem>>, vector<1x512xf32>
    %8 = vector.broadcast %7 : vector<1x512xf32> to vector<64x512xf32>
    %9 = arith.addf %6, %8 : vector<64x512xf32>
    %10 = vector.shape_cast %9 : vector<64x512xf32> to vector<8x8x512xf32>
    %c0_7 = arith.constant 0 : index
    %c0_8 = arith.constant 0 : index
    %c0_9 = arith.constant 0 : index
    %11 = vector.load %arg11[%c0_7, %c0_8, %c0_9] : memref<8x8x512xf32, #tpu.memory_space<vmem>>, vector<8x8x512xf32>
    tpu.vector_store %arg11[%c0_7, %c0_8, %c0_9], %10 {strides = array<i32>} : memref<8x8x512xf32, #tpu.memory_space<vmem>>, vector<8x8x512xf32>,
    %c0_i32_10 = arith.constant 0 : i32
    %12 = arith.index_cast %c0_i32_10 : i32 to index
    %c0_11 = arith.constant 0 : index
    %c0_12 = arith.constant 0 : index
    %13 = vector.load %arg11[%12, %c0_11, %c0_12] : memref<8x8x512xf32, #tpu.memory_space<vmem>>, vector<1x8x512xf32>
    %14 = vector.shape_cast %13 : vector<1x8x512xf32> to vector<8x512xf32>
    %c0_13 = arith.constant 0 : index
    %c0_14 = arith.constant 0 : index
    %15 = vector.load %arg9[%c0_13, %c0_14] : memref<8x128xf32, #tpu.memory_space<vmem>>, vector<8x128xf32>
    %16 = arith.truncf %15 : vector<8x128xf32> to vector<8x128xbf16>
    %c0_15 = arith.constant 0 : index
    %c0_16 = arith.constant 0 : index
    %17 = vector.load %arg5[%c0_15, %c0_16] : memref<128x512xbf16, #tpu.memory_space<vmem>>, vector<128x512xbf16>
    %cst_17 = arith.constant dense<0.000000e+00> : vector<8x512xf32>
    %18 = tpu.matmul %16, %17, %cst_17 {dimension_numbers = #tpu.dot_dimension_numbers<[1], [0], [0], [1], [0, 0, 1, 1], [], []>} : vector<8x128xbf16>, vector<128x512xbf16>, vector<8x512xf32> -> vector<8x512xf32>
    %19 = arith.addf %14, %18 : vector<8x512xf32>
    %20 = vector.extract_strided_slice %19 {offsets = [0, 0], sizes = [8, 128], strides = [1, 1]} : vector<8x512xf32> to vector<8x128xf32>
    %21 = arith.negf %20 : vector<8x128xf32>
    %22 = math.exp %21 : vector<8x128xf32>
    %cst_18 = arith.constant 1.000000e+00 : f32
    %23 = vector.broadcast %cst_18 : f32 to vector<8x128xf32>
    %24 = arith.addf %23, %22 : vector<8x128xf32>
    %25 = arith.divf %23, %24 : vector<8x128xf32>
    %26 = vector.extract_strided_slice %19 {offsets = [0, 128], sizes = [8, 128], strides = [1, 1]} : vector<8x512xf32> to vector<8x128xf32>
    %27 = arith.negf %26 : vector<8x128xf32>
    %28 = math.exp %27 : vector<8x128xf32>
    %cst_19 = arith.constant 1.000000e+00 : f32
    %29 = vector.broadcast %cst_19 : f32 to vector<8x128xf32>
    %30 = arith.addf %29, %28 : vector<8x128xf32>
    %31 = arith.divf %29, %30 : vector<8x128xf32>
    %32 = vector.extract_strided_slice %19 {offsets = [0, 256], sizes = [8, 128], strides = [1, 1]} : vector<8x512xf32> to vector<8x128xf32>
    %33 = math.tanh %32 : vector<8x128xf32>
    %34 = vector.extract_strided_slice %19 {offsets = [0, 384], sizes = [8, 128], strides = [1, 1]} : vector<8x512xf32> to vector<8x128xf32>
    %35 = arith.negf %34 : vector<8x128xf32>
    %36 = math.exp %35 : vector<8x128xf32>
    %cst_20 = arith.constant 1.000000e+00 : f32
    %37 = vector.broadcast %cst_20 : f32 to vector<8x128xf32>
    %38 = arith.addf %37, %36 : vector<8x128xf32>
    %39 = arith.divf %37, %38 : vector<8x128xf32>
    %c0_21 = arith.constant 0 : index
    %c0_22 = arith.constant 0 : index
    %40 = vector.load %arg10[%c0_21, %c0_22] : memref<8x128xf32, #tpu.memory_space<vmem>>, vector<8x128xf32>
    %41 = arith.mulf %31, %40 : vector<8x128xf32>
    %42 = arith.mulf %25, %33 : vector<8x128xf32>
    %43 = arith.addf %41, %42 : vector<8x128xf32>
    %44 = math.tanh %43 : vector<8x128xf32>
    %45 = arith.mulf %39, %44 : vector<8x128xf32>
    %c0_23 = arith.constant 0 : index
    %c0_24 = arith.constant 0 : index
    %46 = vector.load %arg10[%c0_23, %c0_24] : memref<8x128xf32, #tpu.memory_space<vmem>>, vector<8x128xf32>
    tpu.vector_store %arg10[%c0_23, %c0_24], %43 {strides = array<i32>} : memref<8x128xf32, #tpu.memory_space<vmem>>, vector<8x128xf32>,
    %c0_25 = arith.constant 0 : index
    %c0_26 = arith.constant 0 : index
    %47 = vector.load %arg9[%c0_25, %c0_26] : memref<8x128xf32, #tpu.memory_space<vmem>>, vector<8x128xf32>
    tpu.vector_store %arg9[%c0_25, %c0_26], %45 {strides = array<i32>} : memref<8x128xf32, #tpu.memory_space<vmem>>, vector<8x128xf32>,
    %48 = arith.truncf %45 : vector<8x128xf32> to vector<8x128xbf16>
    %49 = arith.index_cast %c0_i32_10 : i32 to index
    %c0_27 = arith.constant 0 : index
    %c0_28 = arith.constant 0 : index
    %50 = vector.load %arg12[%49, %c0_27, %c0_28] : memref<8x8x128xbf16, #tpu.memory_space<vmem>>, vector<1x8x128xbf16>
    %51 = vector.shape_cast %50 : vector<1x8x128xbf16> to vector<8x128xbf16>
    %52 = vector.shape_cast %48 : vector<8x128xbf16> to vector<1x8x128xbf16>
    tpu.vector_store %arg12[%49, %c0_27, %c0_28], %52 {strides = array<i32>} : memref<8x8x128xbf16, #tpu.memory_space<vmem>>, vector<1x8x128xbf16>,
    %c1_i32 = arith.constant 1 : i32
    %53 = arith.index_cast %c1_i32 : i32 to index
    %c0_29 = arith.constant 0 : index
    %c0_30 = arith.constant 0 : index
    %54 = vector.load %arg11[%53, %c0_29, %c0_30] : memref<8x8x512xf32, #tpu.memory_space<vmem>>, vector<1x8x512xf32>
    %55 = vector.shape_cast %54 : vector<1x8x512xf32> to vector<8x512xf32>
    %c0_31 = arith.constant 0 : index
    %c0_32 = arith.constant 0 : index
    %56 = vector.load %arg9[%c0_31, %c0_32] : memref<8x128xf32, #tpu.memory_space<vmem>>, vector<8x128xf32>
    %57 = arith.truncf %56 : vector<8x128xf32> to vector<8x128xbf16>
    %c0_33 = arith.constant 0 : index
    %c0_34 = arith.constant 0 : index
    %58 = vector.load %arg5[%c0_33, %c0_34] : memref<128x512xbf16, #tpu.memory_space<vmem>>, vector<128x512xbf16>
    %cst_35 = arith.constant dense<0.000000e+00> : vector<8x512xf32>
    %59 = tpu.matmul %57, %58, %cst_35 {dimension_numbers = #tpu.dot_dimension_numbers<[1], [0], [0], [1], [0, 0, 1, 1], [], []>} : vector<8x128xbf16>, vector<128x512xbf16>, vector<8x512xf32> -> vector<8x512xf32>
    %60 = arith.addf %55, %59 : vector<8x512xf32>
    %61 = vector.extract_strided_slice %60 {offsets = [0, 0], sizes = [8, 128], strides = [1, 1]} : vector<8x512xf32> to vector<8x128xf32>
    %62 = arith.negf %61 : vector<8x128xf32>
    %63 = math.exp %62 : vector<8x128xf32>
    %cst_36 = arith.constant 1.000000e+00 : f32
    %64 = vector.broadcast %cst_36 : f32 to vector<8x128xf32>
    %65 = arith.addf %64, %63 : vector<8x128xf32>
    %66 = arith.divf %64, %65 : vector<8x128xf32>
    %67 = vector.extract_strided_slice %60 {offsets = [0, 128], sizes = [8, 128], strides = [1, 1]} : vector<8x512xf32> to vector<8x128xf32>
    %68 = arith.negf %67 : vector<8x128xf32>
    %69 = math.exp %68 : vector<8x128xf32>
    %cst_37 = arith.constant 1.000000e+00 : f32
    %70 = vector.broadcast %cst_37 : f32 to vector<8x128xf32>
    %71 = arith.addf %70, %69 : vector<8x128xf32>
    %72 = arith.divf %70, %71 : vector<8x128xf32>
    %73 = vector.extract_strided_slice %60 {offsets = [0, 256], sizes = [8, 128], strides = [1, 1]} : vector<8x512xf32> to vector<8x128xf32>
    %74 = math.tanh %73 : vector<8x128xf32>
    %75 = vector.extract_strided_slice %60 {offsets = [0, 384], sizes = [8, 128], strides = [1, 1]} : vector<8x512xf32> to vector<8x128xf32>
    %76 = arith.negf %75 : vector<8x128xf32>
    %77 = math.exp %76 : vector<8x128xf32>
    %cst_38 = arith.constant 1.000000e+00 : f32
    %78 = vector.broadcast %cst_38 : f32 to vector<8x128xf32>
    %79 = arith.addf %78, %77 : vector<8x128xf32>
    %80 = arith.divf %78, %79 : vector<8x128xf32>
    %c0_39 = arith.constant 0 : index
    %c0_40 = arith.constant 0 : index
    %81 = vector.load %arg10[%c0_39, %c0_40] : memref<8x128xf32, #tpu.memory_space<vmem>>, vector<8x128xf32>
    %82 = arith.mulf %72, %81 : vector<8x128xf32>
    %83 = arith.mulf %66, %74 : vector<8x128xf32>
    %84 = arith.addf %82, %83 : vector<8x128xf32>
    %85 = math.tanh %84 : vector<8x128xf32>
    %86 = arith.mulf %80, %85 : vector<8x128xf32>
    %c0_41 = arith.constant 0 : index
    %c0_42 = arith.constant 0 : index
    %87 = vector.load %arg10[%c0_41, %c0_42] : memref<8x128xf32, #tpu.memory_space<vmem>>, vector<8x128xf32>
    tpu.vector_store %arg10[%c0_41, %c0_42], %84 {strides = array<i32>} : memref<8x128xf32, #tpu.memory_space<vmem>>, vector<8x128xf32>,
    %c0_43 = arith.constant 0 : index
    %c0_44 = arith.constant 0 : index
    %88 = vector.load %arg9[%c0_43, %c0_44] : memref<8x128xf32, #tpu.memory_space<vmem>>, vector<8x128xf32>
    tpu.vector_store %arg9[%c0_43, %c0_44], %86 {strides = array<i32>} : memref<8x128xf32, #tpu.memory_space<vmem>>, vector<8x128xf32>,
    %89 = arith.truncf %86 : vector<8x128xf32> to vector<8x128xbf16>
    %90 = arith.index_cast %c1_i32 : i32 to index
    %c0_45 = arith.constant 0 : index
    %c0_46 = arith.constant 0 : index
    %91 = vector.load %arg12[%90, %c0_45, %c0_46] : memref<8x8x128xbf16, #tpu.memory_space<vmem>>, vector<1x8x128xbf16>
    %92 = vector.shape_cast %91 : vector<1x8x128xbf16> to vector<8x128xbf16>
    %93 = vector.shape_cast %89 : vector<8x128xbf16> to vector<1x8x128xbf16>
    tpu.vector_store %arg12[%90, %c0_45, %c0_46], %93 {strides = array<i32>} : memref<8x8x128xbf16, #tpu.memory_space<vmem>>, vector<1x8x128xbf16>,
    %c2_i32 = arith.constant 2 : i32
    %94 = arith.index_cast %c2_i32 : i32 to index
    %c0_47 = arith.constant 0 : index
    %c0_48 = arith.constant 0 : index
    %95 = vector.load %arg11[%94, %c0_47, %c0_48] : memref<8x8x512xf32, #tpu.memory_space<vmem>>, vector<1x8x512xf32>
    %96 = vector.shape_cast %95 : vector<1x8x512xf32> to vector<8x512xf32>
    %c0_49 = arith.constant 0 : index
    %c0_50 = arith.constant 0 : index
    %97 = vector.load %arg9[%c0_49, %c0_50] : memref<8x128xf32, #tpu.memory_space<vmem>>, vector<8x128xf32>
    %98 = arith.truncf %97 : vector<8x128xf32> to vector<8x128xbf16>
    %c0_51 = arith.constant 0 : index
    %c0_52 = arith.constant 0 : index
    %99 = vector.load %arg5[%c0_51, %c0_52] : memref<128x512xbf16, #tpu.memory_space<vmem>>, vector<128x512xbf16>
    %cst_53 = arith.constant dense<0.000000e+00> : vector<8x512xf32>
    %100 = tpu.matmul %98, %99, %cst_53 {dimension_numbers = #tpu.dot_dimension_numbers<[1], [0], [0], [1], [0, 0, 1, 1], [], []>} : vector<8x128xbf16>, vector<128x512xbf16>, vector<8x512xf32> -> vector<8x512xf32>
    %101 = arith.addf %96, %100 : vector<8x512xf32>
    %102 = vector.extract_strided_slice %101 {offsets = [0, 0], sizes = [8, 128], strides = [1, 1]} : vector<8x512xf32> to vector<8x128xf32>
    %103 = arith.negf %102 : vector<8x128xf32>
    %104 = math.exp %103 : vector<8x128xf32>
    %cst_54 = arith.constant 1.000000e+00 : f32
    %105 = vector.broadcast %cst_54 : f32 to vector<8x128xf32>
    %106 = arith.addf %105, %104 : vector<8x128xf32>
    %107 = arith.divf %105, %106 : vector<8x128xf32>
    %108 = vector.extract_strided_slice %101 {offsets = [0, 128], sizes = [8, 128], strides = [1, 1]} : vector<8x512xf32> to vector<8x128xf32>
    %109 = arith.negf %108 : vector<8x128xf32>
    %110 = math.exp %109 : vector<8x128xf32>
    %cst_55 = arith.constant 1.000000e+00 : f32
    %111 = vector.broadcast %cst_55 : f32 to vector<8x128xf32>
    %112 = arith.addf %111, %110 : vector<8x128xf32>
    %113 = arith.divf %111, %112 : vector<8x128xf32>
    %114 = vector.extract_strided_slice %101 {offsets = [0, 256], sizes = [8, 128], strides = [1, 1]} : vector<8x512xf32> to vector<8x128xf32>
    %115 = math.tanh %114 : vector<8x128xf32>
    %116 = vector.extract_strided_slice %101 {offsets = [0, 384], sizes = [8, 128], strides = [1, 1]} : vector<8x512xf32> to vector<8x128xf32>
    %117 = arith.negf %116 : vector<8x128xf32>
    %118 = math.exp %117 : vector<8x128xf32>
    %cst_56 = arith.constant 1.000000e+00 : f32
    %119 = vector.broadcast %cst_56 : f32 to vector<8x128xf32>
    %120 = arith.addf %119, %118 : vector<8x128xf32>
    %121 = arith.divf %119, %120 : vector<8x128xf32>
    %c0_57 = arith.constant 0 : index
    %c0_58 = arith.constant 0 : index
    %122 = vector.load %arg10[%c0_57, %c0_58] : memref<8x128xf32, #tpu.memory_space<vmem>>, vector<8x128xf32>
    %123 = arith.mulf %113, %122 : vector<8x128xf32>
    %124 = arith.mulf %107, %115 : vector<8x128xf32>
    %125 = arith.addf %123, %124 : vector<8x128xf32>
    %126 = math.tanh %125 : vector<8x128xf32>
    %127 = arith.mulf %121, %126 : vector<8x128xf32>
    %c0_59 = arith.constant 0 : index
    %c0_60 = arith.constant 0 : index
    %128 = vector.load %arg10[%c0_59, %c0_60] : memref<8x128xf32, #tpu.memory_space<vmem>>, vector<8x128xf32>
    tpu.vector_store %arg10[%c0_59, %c0_60], %125 {strides = array<i32>} : memref<8x128xf32, #tpu.memory_space<vmem>>, vector<8x128xf32>,
    %c0_61 = arith.constant 0 : index
    %c0_62 = arith.constant 0 : index
    %129 = vector.load %arg9[%c0_61, %c0_62] : memref<8x128xf32, #tpu.memory_space<vmem>>, vector<8x128xf32>
    tpu.vector_store %arg9[%c0_61, %c0_62], %127 {strides = array<i32>} : memref<8x128xf32, #tpu.memory_space<vmem>>, vector<8x128xf32>,
    %130 = arith.truncf %127 : vector<8x128xf32> to vector<8x128xbf16>
    %131 = arith.index_cast %c2_i32 : i32 to index
    %c0_63 = arith.constant 0 : index
    %c0_64 = arith.constant 0 : index
    %132 = vector.load %arg12[%131, %c0_63, %c0_64] : memref<8x8x128xbf16, #tpu.memory_space<vmem>>, vector<1x8x128xbf16>
    %133 = vector.shape_cast %132 : vector<1x8x128xbf16> to vector<8x128xbf16>
    %134 = vector.shape_cast %130 : vector<8x128xbf16> to vector<1x8x128xbf16>
    tpu.vector_store %arg12[%131, %c0_63, %c0_64], %134 {strides = array<i32>} : memref<8x8x128xbf16, #tpu.memory_space<vmem>>, vector<1x8x128xbf16>,
    %c3_i32 = arith.constant 3 : i32
    %135 = arith.index_cast %c3_i32 : i32 to index
    %c0_65 = arith.constant 0 : index
    %c0_66 = arith.constant 0 : index
    %136 = vector.load %arg11[%135, %c0_65, %c0_66] : memref<8x8x512xf32, #tpu.memory_space<vmem>>, vector<1x8x512xf32>
    %137 = vector.shape_cast %136 : vector<1x8x512xf32> to vector<8x512xf32>
    %c0_67 = arith.constant 0 : index
    %c0_68 = arith.constant 0 : index
    %138 = vector.load %arg9[%c0_67, %c0_68] : memref<8x128xf32, #tpu.memory_space<vmem>>, vector<8x128xf32>
    %139 = arith.truncf %138 : vector<8x128xf32> to vector<8x128xbf16>
    %c0_69 = arith.constant 0 : index
    %c0_70 = arith.constant 0 : index
    %140 = vector.load %arg5[%c0_69, %c0_70] : memref<128x512xbf16, #tpu.memory_space<vmem>>, vector<128x512xbf16>
    %cst_71 = arith.constant dense<0.000000e+00> : vector<8x512xf32>
    %141 = tpu.matmul %139, %140, %cst_71 {dimension_numbers = #tpu.dot_dimension_numbers<[1], [0], [0], [1], [0, 0, 1, 1], [], []>} : vector<8x128xbf16>, vector<128x512xbf16>, vector<8x512xf32> -> vector<8x512xf32>
    %142 = arith.addf %137, %141 : vector<8x512xf32>
    %143 = vector.extract_strided_slice %142 {offsets = [0, 0], sizes = [8, 128], strides = [1, 1]} : vector<8x512xf32> to vector<8x128xf32>
    %144 = arith.negf %143 : vector<8x128xf32>
    %145 = math.exp %144 : vector<8x128xf32>
    %cst_72 = arith.constant 1.000000e+00 : f32
    %146 = vector.broadcast %cst_72 : f32 to vector<8x128xf32>
    %147 = arith.addf %146, %145 : vector<8x128xf32>
    %148 = arith.divf %146, %147 : vector<8x128xf32>
    %149 = vector.extract_strided_slice %142 {offsets = [0, 128], sizes = [8, 128], strides = [1, 1]} : vector<8x512xf32> to vector<8x128xf32>
    %150 = arith.negf %149 : vector<8x128xf32>
    %151 = math.exp %150 : vector<8x128xf32>
    %cst_73 = arith.constant 1.000000e+00 : f32
    %152 = vector.broadcast %cst_73 : f32 to vector<8x128xf32>
    %153 = arith.addf %152, %151 : vector<8x128xf32>
    %154 = arith.divf %152, %153 : vector<8x128xf32>
    %155 = vector.extract_strided_slice %142 {offsets = [0, 256], sizes = [8, 128], strides = [1, 1]} : vector<8x512xf32> to vector<8x128xf32>
    %156 = math.tanh %155 : vector<8x128xf32>
    %157 = vector.extract_strided_slice %142 {offsets = [0, 384], sizes = [8, 128], strides = [1, 1]} : vector<8x512xf32> to vector<8x128xf32>
    %158 = arith.negf %157 : vector<8x128xf32>
    %159 = math.exp %158 : vector<8x128xf32>
    %cst_74 = arith.constant 1.000000e+00 : f32
    %160 = vector.broadcast %cst_74 : f32 to vector<8x128xf32>
    %161 = arith.addf %160, %159 : vector<8x128xf32>
    %162 = arith.divf %160, %161 : vector<8x128xf32>
    %c0_75 = arith.constant 0 : index
    %c0_76 = arith.constant 0 : index
    %163 = vector.load %arg10[%c0_75, %c0_76] : memref<8x128xf32, #tpu.memory_space<vmem>>, vector<8x128xf32>
    %164 = arith.mulf %154, %163 : vector<8x128xf32>
    %165 = arith.mulf %148, %156 : vector<8x128xf32>
    %166 = arith.addf %164, %165 : vector<8x128xf32>
    %167 = math.tanh %166 : vector<8x128xf32>
    %168 = arith.mulf %162, %167 : vector<8x128xf32>
    %c0_77 = arith.constant 0 : index
    %c0_78 = arith.constant 0 : index
    %169 = vector.load %arg10[%c0_77, %c0_78] : memref<8x128xf32, #tpu.memory_space<vmem>>, vector<8x128xf32>
    tpu.vector_store %arg10[%c0_77, %c0_78], %166 {strides = array<i32>} : memref<8x128xf32, #tpu.memory_space<vmem>>, vector<8x128xf32>,
    %c0_79 = arith.constant 0 : index
    %c0_80 = arith.constant 0 : index
    %170 = vector.load %arg9[%c0_79, %c0_80] : memref<8x128xf32, #tpu.memory_space<vmem>>, vector<8x128xf32>
    tpu.vector_store %arg9[%c0_79, %c0_80], %168 {strides = array<i32>} : memref<8x128xf32, #tpu.memory_space<vmem>>, vector<8x128xf32>,
    %171 = arith.truncf %168 : vector<8x128xf32> to vector<8x128xbf16>
    %172 = arith.index_cast %c3_i32 : i32 to index
    %c0_81 = arith.constant 0 : index
    %c0_82 = arith.constant 0 : index
    %173 = vector.load %arg12[%172, %c0_81, %c0_82] : memref<8x8x128xbf16, #tpu.memory_space<vmem>>, vector<1x8x128xbf16>
    %174 = vector.shape_cast %173 : vector<1x8x128xbf16> to vector<8x128xbf16>
    %175 = vector.shape_cast %171 : vector<8x128xbf16> to vector<1x8x128xbf16>
    tpu.vector_store %arg12[%172, %c0_81, %c0_82], %175 {strides = array<i32>} : memref<8x8x128xbf16, #tpu.memory_space<vmem>>, vector<1x8x128xbf16>,
    %c4_i32 = arith.constant 4 : i32
    %176 = arith.index_cast %c4_i32 : i32 to index
    %c0_83 = arith.constant 0 : index
    %c0_84 = arith.constant 0 : index
    %177 = vector.load %arg11[%176, %c0_83, %c0_84] : memref<8x8x512xf32, #tpu.memory_space<vmem>>, vector<1x8x512xf32>
    %178 = vector.shape_cast %177 : vector<1x8x512xf32> to vector<8x512xf32>
    %c0_85 = arith.constant 0 : index
    %c0_86 = arith.constant 0 : index
    %179 = vector.load %arg9[%c0_85, %c0_86] : memref<8x128xf32, #tpu.memory_space<vmem>>, vector<8x128xf32>
    %180 = arith.truncf %179 : vector<8x128xf32> to vector<8x128xbf16>
    %c0_87 = arith.constant 0 : index
    %c0_88 = arith.constant 0 : index
    %181 = vector.load %arg5[%c0_87, %c0_88] : memref<128x512xbf16, #tpu.memory_space<vmem>>, vector<128x512xbf16>
    %cst_89 = arith.constant dense<0.000000e+00> : vector<8x512xf32>
    %182 = tpu.matmul %180, %181, %cst_89 {dimension_numbers = #tpu.dot_dimension_numbers<[1], [0], [0], [1], [0, 0, 1, 1], [], []>} : vector<8x128xbf16>, vector<128x512xbf16>, vector<8x512xf32> -> vector<8x512xf32>
    %183 = arith.addf %178, %182 : vector<8x512xf32>
    %184 = vector.extract_strided_slice %183 {offsets = [0, 0], sizes = [8, 128], strides = [1, 1]} : vector<8x512xf32> to vector<8x128xf32>
    %185 = arith.negf %184 : vector<8x128xf32>
    %186 = math.exp %185 : vector<8x128xf32>
    %cst_90 = arith.constant 1.000000e+00 : f32
    %187 = vector.broadcast %cst_90 : f32 to vector<8x128xf32>
    %188 = arith.addf %187, %186 : vector<8x128xf32>
    %189 = arith.divf %187, %188 : vector<8x128xf32>
    %190 = vector.extract_strided_slice %183 {offsets = [0, 128], sizes = [8, 128], strides = [1, 1]} : vector<8x512xf32> to vector<8x128xf32>
    %191 = arith.negf %190 : vector<8x128xf32>
    %192 = math.exp %191 : vector<8x128xf32>
    %cst_91 = arith.constant 1.000000e+00 : f32
    %193 = vector.broadcast %cst_91 : f32 to vector<8x128xf32>
    %194 = arith.addf %193, %192 : vector<8x128xf32>
    %195 = arith.divf %193, %194 : vector<8x128xf32>
    %196 = vector.extract_strided_slice %183 {offsets = [0, 256], sizes = [8, 128], strides = [1, 1]} : vector<8x512xf32> to vector<8x128xf32>
    %197 = math.tanh %196 : vector<8x128xf32>
    %198 = vector.extract_strided_slice %183 {offsets = [0, 384], sizes = [8, 128], strides = [1, 1]} : vector<8x512xf32> to vector<8x128xf32>
    %199 = arith.negf %198 : vector<8x128xf32>
    %200 = math.exp %199 : vector<8x128xf32>
    %cst_92 = arith.constant 1.000000e+00 : f32
    %201 = vector.broadcast %cst_92 : f32 to vector<8x128xf32>
    %202 = arith.addf %201, %200 : vector<8x128xf32>
    %203 = arith.divf %201, %202 : vector<8x128xf32>
    %c0_93 = arith.constant 0 : index
    %c0_94 = arith.constant 0 : index
    %204 = vector.load %arg10[%c0_93, %c0_94] : memref<8x128xf32, #tpu.memory_space<vmem>>, vector<8x128xf32>
    %205 = arith.mulf %195, %204 : vector<8x128xf32>
    %206 = arith.mulf %189, %197 : vector<8x128xf32>
    %207 = arith.addf %205, %206 : vector<8x128xf32>
    %208 = math.tanh %207 : vector<8x128xf32>
    %209 = arith.mulf %203, %208 : vector<8x128xf32>
    %c0_95 = arith.constant 0 : index
    %c0_96 = arith.constant 0 : index
    %210 = vector.load %arg10[%c0_95, %c0_96] : memref<8x128xf32, #tpu.memory_space<vmem>>, vector<8x128xf32>
    tpu.vector_store %arg10[%c0_95, %c0_96], %207 {strides = array<i32>} : memref<8x128xf32, #tpu.memory_space<vmem>>, vector<8x128xf32>,
    %c0_97 = arith.constant 0 : index
    %c0_98 = arith.constant 0 : index
    %211 = vector.load %arg9[%c0_97, %c0_98] : memref<8x128xf32, #tpu.memory_space<vmem>>, vector<8x128xf32>
    tpu.vector_store %arg9[%c0_97, %c0_98], %209 {strides = array<i32>} : memref<8x128xf32, #tpu.memory_space<vmem>>, vector<8x128xf32>,
    %212 = arith.truncf %209 : vector<8x128xf32> to vector<8x128xbf16>
    %213 = arith.index_cast %c4_i32 : i32 to index
    %c0_99 = arith.constant 0 : index
    %c0_100 = arith.constant 0 : index
    %214 = vector.load %arg12[%213, %c0_99, %c0_100] : memref<8x8x128xbf16, #tpu.memory_space<vmem>>, vector<1x8x128xbf16>
    %215 = vector.shape_cast %214 : vector<1x8x128xbf16> to vector<8x128xbf16>
    %216 = vector.shape_cast %212 : vector<8x128xbf16> to vector<1x8x128xbf16>
    tpu.vector_store %arg12[%213, %c0_99, %c0_100], %216 {strides = array<i32>} : memref<8x8x128xbf16, #tpu.memory_space<vmem>>, vector<1x8x128xbf16>,
    %c5_i32 = arith.constant 5 : i32
    %217 = arith.index_cast %c5_i32 : i32 to index
    %c0_101 = arith.constant 0 : index
    %c0_102 = arith.constant 0 : index
    %218 = vector.load %arg11[%217, %c0_101, %c0_102] : memref<8x8x512xf32, #tpu.memory_space<vmem>>, vector<1x8x512xf32>
    %219 = vector.shape_cast %218 : vector<1x8x512xf32> to vector<8x512xf32>
    %c0_103 = arith.constant 0 : index
    %c0_104 = arith.constant 0 : index
    %220 = vector.load %arg9[%c0_103, %c0_104] : memref<8x128xf32, #tpu.memory_space<vmem>>, vector<8x128xf32>
    %221 = arith.truncf %220 : vector<8x128xf32> to vector<8x128xbf16>
    %c0_105 = arith.constant 0 : index
    %c0_106 = arith.constant 0 : index
    %222 = vector.load %arg5[%c0_105, %c0_106] : memref<128x512xbf16, #tpu.memory_space<vmem>>, vector<128x512xbf16>
    %cst_107 = arith.constant dense<0.000000e+00> : vector<8x512xf32>
    %223 = tpu.matmul %221, %222, %cst_107 {dimension_numbers = #tpu.dot_dimension_numbers<[1], [0], [0], [1], [0, 0, 1, 1], [], []>} : vector<8x128xbf16>, vector<128x512xbf16>, vector<8x512xf32> -> vector<8x512xf32>
    %224 = arith.addf %219, %223 : vector<8x512xf32>
    %225 = vector.extract_strided_slice %224 {offsets = [0, 0], sizes = [8, 128], strides = [1, 1]} : vector<8x512xf32> to vector<8x128xf32>
    %226 = arith.negf %225 : vector<8x128xf32>
    %227 = math.exp %226 : vector<8x128xf32>
    %cst_108 = arith.constant 1.000000e+00 : f32
    %228 = vector.broadcast %cst_108 : f32 to vector<8x128xf32>
    %229 = arith.addf %228, %227 : vector<8x128xf32>
    %230 = arith.divf %228, %229 : vector<8x128xf32>
    %231 = vector.extract_strided_slice %224 {offsets = [0, 128], sizes = [8, 128], strides = [1, 1]} : vector<8x512xf32> to vector<8x128xf32>
    %232 = arith.negf %231 : vector<8x128xf32>
    %233 = math.exp %232 : vector<8x128xf32>
    %cst_109 = arith.constant 1.000000e+00 : f32
    %234 = vector.broadcast %cst_109 : f32 to vector<8x128xf32>
    %235 = arith.addf %234, %233 : vector<8x128xf32>
    %236 = arith.divf %234, %235 : vector<8x128xf32>
    %237 = vector.extract_strided_slice %224 {offsets = [0, 256], sizes = [8, 128], strides = [1, 1]} : vector<8x512xf32> to vector<8x128xf32>
    %238 = math.tanh %237 : vector<8x128xf32>
    %239 = vector.extract_strided_slice %224 {offsets = [0, 384], sizes = [8, 128], strides = [1, 1]} : vector<8x512xf32> to vector<8x128xf32>
    %240 = arith.negf %239 : vector<8x128xf32>
    %241 = math.exp %240 : vector<8x128xf32>
    %cst_110 = arith.constant 1.000000e+00 : f32
    %242 = vector.broadcast %cst_110 : f32 to vector<8x128xf32>
    %243 = arith.addf %242, %241 : vector<8x128xf32>
    %244 = arith.divf %242, %243 : vector<8x128xf32>
    %c0_111 = arith.constant 0 : index
    %c0_112 = arith.constant 0 : index
    %245 = vector.load %arg10[%c0_111, %c0_112] : memref<8x128xf32, #tpu.memory_space<vmem>>, vector<8x128xf32>
    %246 = arith.mulf %236, %245 : vector<8x128xf32>
    %247 = arith.mulf %230, %238 : vector<8x128xf32>
    %248 = arith.addf %246, %247 : vector<8x128xf32>
    %249 = math.tanh %248 : vector<8x128xf32>
    %250 = arith.mulf %244, %249 : vector<8x128xf32>
    %c0_113 = arith.constant 0 : index
    %c0_114 = arith.constant 0 : index
    %251 = vector.load %arg10[%c0_113, %c0_114] : memref<8x128xf32, #tpu.memory_space<vmem>>, vector<8x128xf32>
    tpu.vector_store %arg10[%c0_113, %c0_114], %248 {strides = array<i32>} : memref<8x128xf32, #tpu.memory_space<vmem>>, vector<8x128xf32>,
    %c0_115 = arith.constant 0 : index
    %c0_116 = arith.constant 0 : index
    %252 = vector.load %arg9[%c0_115, %c0_116] : memref<8x128xf32, #tpu.memory_space<vmem>>, vector<8x128xf32>
    tpu.vector_store %arg9[%c0_115, %c0_116], %250 {strides = array<i32>} : memref<8x128xf32, #tpu.memory_space<vmem>>, vector<8x128xf32>,
    %253 = arith.truncf %250 : vector<8x128xf32> to vector<8x128xbf16>
    %254 = arith.index_cast %c5_i32 : i32 to index
    %c0_117 = arith.constant 0 : index
    %c0_118 = arith.constant 0 : index
    %255 = vector.load %arg12[%254, %c0_117, %c0_118] : memref<8x8x128xbf16, #tpu.memory_space<vmem>>, vector<1x8x128xbf16>
    %256 = vector.shape_cast %255 : vector<1x8x128xbf16> to vector<8x128xbf16>
    %257 = vector.shape_cast %253 : vector<8x128xbf16> to vector<1x8x128xbf16>
    tpu.vector_store %arg12[%254, %c0_117, %c0_118], %257 {strides = array<i32>} : memref<8x8x128xbf16, #tpu.memory_space<vmem>>, vector<1x8x128xbf16>,
    %c6_i32 = arith.constant 6 : i32
    %258 = arith.index_cast %c6_i32 : i32 to index
    %c0_119 = arith.constant 0 : index
    %c0_120 = arith.constant 0 : index
    %259 = vector.load %arg11[%258, %c0_119, %c0_120] : memref<8x8x512xf32, #tpu.memory_space<vmem>>, vector<1x8x512xf32>
    %260 = vector.shape_cast %259 : vector<1x8x512xf32> to vector<8x512xf32>
    %c0_121 = arith.constant 0 : index
    %c0_122 = arith.constant 0 : index
    %261 = vector.load %arg9[%c0_121, %c0_122] : memref<8x128xf32, #tpu.memory_space<vmem>>, vector<8x128xf32>
    %262 = arith.truncf %261 : vector<8x128xf32> to vector<8x128xbf16>
    %c0_123 = arith.constant 0 : index
    %c0_124 = arith.constant 0 : index
    %263 = vector.load %arg5[%c0_123, %c0_124] : memref<128x512xbf16, #tpu.memory_space<vmem>>, vector<128x512xbf16>
    %cst_125 = arith.constant dense<0.000000e+00> : vector<8x512xf32>
    %264 = tpu.matmul %262, %263, %cst_125 {dimension_numbers = #tpu.dot_dimension_numbers<[1], [0], [0], [1], [0, 0, 1, 1], [], []>} : vector<8x128xbf16>, vector<128x512xbf16>, vector<8x512xf32> -> vector<8x512xf32>
    %265 = arith.addf %260, %264 : vector<8x512xf32>
    %266 = vector.extract_strided_slice %265 {offsets = [0, 0], sizes = [8, 128], strides = [1, 1]} : vector<8x512xf32> to vector<8x128xf32>
    %267 = arith.negf %266 : vector<8x128xf32>
    %268 = math.exp %267 : vector<8x128xf32>
    %cst_126 = arith.constant 1.000000e+00 : f32
    %269 = vector.broadcast %cst_126 : f32 to vector<8x128xf32>
    %270 = arith.addf %269, %268 : vector<8x128xf32>
    %271 = arith.divf %269, %270 : vector<8x128xf32>
    %272 = vector.extract_strided_slice %265 {offsets = [0, 128], sizes = [8, 128], strides = [1, 1]} : vector<8x512xf32> to vector<8x128xf32>
    %273 = arith.negf %272 : vector<8x128xf32>
    %274 = math.exp %273 : vector<8x128xf32>
    %cst_127 = arith.constant 1.000000e+00 : f32
    %275 = vector.broadcast %cst_127 : f32 to vector<8x128xf32>
    %276 = arith.addf %275, %274 : vector<8x128xf32>
    %277 = arith.divf %275, %276 : vector<8x128xf32>
    %278 = vector.extract_strided_slice %265 {offsets = [0, 256], sizes = [8, 128], strides = [1, 1]} : vector<8x512xf32> to vector<8x128xf32>
    %279 = math.tanh %278 : vector<8x128xf32>
    %280 = vector.extract_strided_slice %265 {offsets = [0, 384], sizes = [8, 128], strides = [1, 1]} : vector<8x512xf32> to vector<8x128xf32>
    %281 = arith.negf %280 : vector<8x128xf32>
    %282 = math.exp %281 : vector<8x128xf32>
    %cst_128 = arith.constant 1.000000e+00 : f32
    %283 = vector.broadcast %cst_128 : f32 to vector<8x128xf32>
    %284 = arith.addf %283, %282 : vector<8x128xf32>
    %285 = arith.divf %283, %284 : vector<8x128xf32>
    %c0_129 = arith.constant 0 : index
    %c0_130 = arith.constant 0 : index
    %286 = vector.load %arg10[%c0_129, %c0_130] : memref<8x128xf32, #tpu.memory_space<vmem>>, vector<8x128xf32>
    %287 = arith.mulf %277, %286 : vector<8x128xf32>
    %288 = arith.mulf %271, %279 : vector<8x128xf32>
    %289 = arith.addf %287, %288 : vector<8x128xf32>
    %290 = math.tanh %289 : vector<8x128xf32>
    %291 = arith.mulf %285, %290 : vector<8x128xf32>
    %c0_131 = arith.constant 0 : index
    %c0_132 = arith.constant 0 : index
    %292 = vector.load %arg10[%c0_131, %c0_132] : memref<8x128xf32, #tpu.memory_space<vmem>>, vector<8x128xf32>
    tpu.vector_store %arg10[%c0_131, %c0_132], %289 {strides = array<i32>} : memref<8x128xf32, #tpu.memory_space<vmem>>, vector<8x128xf32>,
    %c0_133 = arith.constant 0 : index
    %c0_134 = arith.constant 0 : index
    %293 = vector.load %arg9[%c0_133, %c0_134] : memref<8x128xf32, #tpu.memory_space<vmem>>, vector<8x128xf32>
    tpu.vector_store %arg9[%c0_133, %c0_134], %291 {strides = array<i32>} : memref<8x128xf32, #tpu.memory_space<vmem>>, vector<8x128xf32>,
    %294 = arith.truncf %291 : vector<8x128xf32> to vector<8x128xbf16>
    %295 = arith.index_cast %c6_i32 : i32 to index
    %c0_135 = arith.constant 0 : index
    %c0_136 = arith.constant 0 : index
    %296 = vector.load %arg12[%295, %c0_135, %c0_136] : memref<8x8x128xbf16, #tpu.memory_space<vmem>>, vector<1x8x128xbf16>
    %297 = vector.shape_cast %296 : vector<1x8x128xbf16> to vector<8x128xbf16>
    %298 = vector.shape_cast %294 : vector<8x128xbf16> to vector<1x8x128xbf16>
    tpu.vector_store %arg12[%295, %c0_135, %c0_136], %298 {strides = array<i32>} : memref<8x8x128xbf16, #tpu.memory_space<vmem>>, vector<1x8x128xbf16>,
    %c7_i32 = arith.constant 7 : i32
    %299 = arith.index_cast %c7_i32 : i32 to index
    %c0_137 = arith.constant 0 : index
    %c0_138 = arith.constant 0 : index
    %300 = vector.load %arg11[%299, %c0_137, %c0_138] : memref<8x8x512xf32, #tpu.memory_space<vmem>>, vector<1x8x512xf32>
    %301 = vector.shape_cast %300 : vector<1x8x512xf32> to vector<8x512xf32>
    %c0_139 = arith.constant 0 : index
    %c0_140 = arith.constant 0 : index
    %302 = vector.load %arg9[%c0_139, %c0_140] : memref<8x128xf32, #tpu.memory_space<vmem>>, vector<8x128xf32>
    %303 = arith.truncf %302 : vector<8x128xf32> to vector<8x128xbf16>
    %c0_141 = arith.constant 0 : index
    %c0_142 = arith.constant 0 : index
    %304 = vector.load %arg5[%c0_141, %c0_142] : memref<128x512xbf16, #tpu.memory_space<vmem>>, vector<128x512xbf16>
    %cst_143 = arith.constant dense<0.000000e+00> : vector<8x512xf32>
    %305 = tpu.matmul %303, %304, %cst_143 {dimension_numbers = #tpu.dot_dimension_numbers<[1], [0], [0], [1], [0, 0, 1, 1], [], []>} : vector<8x128xbf16>, vector<128x512xbf16>, vector<8x512xf32> -> vector<8x512xf32>
    %306 = arith.addf %301, %305 : vector<8x512xf32>
    %307 = vector.extract_strided_slice %306 {offsets = [0, 0], sizes = [8, 128], strides = [1, 1]} : vector<8x512xf32> to vector<8x128xf32>
    %308 = arith.negf %307 : vector<8x128xf32>
    %309 = math.exp %308 : vector<8x128xf32>
    %cst_144 = arith.constant 1.000000e+00 : f32
    %310 = vector.broadcast %cst_144 : f32 to vector<8x128xf32>
    %311 = arith.addf %310, %309 : vector<8x128xf32>
    %312 = arith.divf %310, %311 : vector<8x128xf32>
    %313 = vector.extract_strided_slice %306 {offsets = [0, 128], sizes = [8, 128], strides = [1, 1]} : vector<8x512xf32> to vector<8x128xf32>
    %314 = arith.negf %313 : vector<8x128xf32>
    %315 = math.exp %314 : vector<8x128xf32>
    %cst_145 = arith.constant 1.000000e+00 : f32
    %316 = vector.broadcast %cst_145 : f32 to vector<8x128xf32>
    %317 = arith.addf %316, %315 : vector<8x128xf32>
    %318 = arith.divf %316, %317 : vector<8x128xf32>
    %319 = vector.extract_strided_slice %306 {offsets = [0, 256], sizes = [8, 128], strides = [1, 1]} : vector<8x512xf32> to vector<8x128xf32>
    %320 = math.tanh %319 : vector<8x128xf32>
    %321 = vector.extract_strided_slice %306 {offsets = [0, 384], sizes = [8, 128], strides = [1, 1]} : vector<8x512xf32> to vector<8x128xf32>
    %322 = arith.negf %321 : vector<8x128xf32>
    %323 = math.exp %322 : vector<8x128xf32>
    %cst_146 = arith.constant 1.000000e+00 : f32
    %324 = vector.broadcast %cst_146 : f32 to vector<8x128xf32>
    %325 = arith.addf %324, %323 : vector<8x128xf32>
    %326 = arith.divf %324, %325 : vector<8x128xf32>
    %c0_147 = arith.constant 0 : index
    %c0_148 = arith.constant 0 : index
    %327 = vector.load %arg10[%c0_147, %c0_148] : memref<8x128xf32, #tpu.memory_space<vmem>>, vector<8x128xf32>
    %328 = arith.mulf %318, %327 : vector<8x128xf32>
    %329 = arith.mulf %312, %320 : vector<8x128xf32>
    %330 = arith.addf %328, %329 : vector<8x128xf32>
    %331 = math.tanh %330 : vector<8x128xf32>
    %332 = arith.mulf %326, %331 : vector<8x128xf32>
    %c0_149 = arith.constant 0 : index
    %c0_150 = arith.constant 0 : index
    %333 = vector.load %arg10[%c0_149, %c0_150] : memref<8x128xf32, #tpu.memory_space<vmem>>, vector<8x128xf32>
    tpu.vector_store %arg10[%c0_149, %c0_150], %330 {strides = array<i32>} : memref<8x128xf32, #tpu.memory_space<vmem>>, vector<8x128xf32>,
    %c0_151 = arith.constant 0 : index
    %c0_152 = arith.constant 0 : index
    %334 = vector.load %arg9[%c0_151, %c0_152] : memref<8x128xf32, #tpu.memory_space<vmem>>, vector<8x128xf32>
    tpu.vector_store %arg9[%c0_151, %c0_152], %332 {strides = array<i32>} : memref<8x128xf32, #tpu.memory_space<vmem>>, vector<8x128xf32>,
    %335 = arith.truncf %332 : vector<8x128xf32> to vector<8x128xbf16>
    %336 = arith.index_cast %c7_i32 : i32 to index
    %c0_153 = arith.constant 0 : index
    %c0_154 = arith.constant 0 : index
    %337 = vector.load %arg12[%336, %c0_153, %c0_154] : memref<8x8x128xbf16, #tpu.memory_space<vmem>>, vector<1x8x128xbf16>
    %338 = vector.shape_cast %337 : vector<1x8x128xbf16> to vector<8x128xbf16>
    %339 = vector.shape_cast %335 : vector<8x128xbf16> to vector<1x8x128xbf16>
    tpu.vector_store %arg12[%336, %c0_153, %c0_154], %339 {strides = array<i32>} : memref<8x8x128xbf16, #tpu.memory_space<vmem>>, vector<1x8x128xbf16>,
    %c8_i32 = arith.constant 8 : i32
    %c0_155 = arith.constant 0 : index
    %c0_156 = arith.constant 0 : index
    %c0_157 = arith.constant 0 : index
    %340 = vector.load %arg12[%c0_155, %c0_156, %c0_157] : memref<8x8x128xbf16, #tpu.memory_space<vmem>>, vector<8x8x128xbf16>
    %341 = vector.shape_cast %340 : vector<8x8x128xbf16> to vector<64x128xbf16>
    %c0_158 = arith.constant 0 : index
    %c0_159 = arith.constant 0 : index
    %342 = vector.load %arg6[%c0_158, %c0_159] : memref<128x128xbf16, #tpu.memory_space<vmem>>, vector<128x128xbf16>
    %cst_160 = arith.constant dense<0.000000e+00> : vector<64x128xf32>
    %343 = tpu.matmul %341, %342, %cst_160 {dimension_numbers = #tpu.dot_dimension_numbers<[1], [0], [0], [1], [0, 0, 1, 1], [], []>} : vector<64x128xbf16>, vector<128x128xbf16>, vector<64x128xf32> -> vector<64x128xf32>
    %c0_161 = arith.constant 0 : index
    %c0_162 = arith.constant 0 : index
    %344 = vector.load %arg7[%c0_161, %c0_162] : memref<1x128xf32, #tpu.memory_space<vmem>>, vector<1x128xf32>
    %345 = vector.broadcast %344 : vector<1x128xf32> to vector<64x128xf32>
    %346 = arith.addf %343, %345 : vector<64x128xf32>
    %347 = arith.truncf %346 : vector<64x128xf32> to vector<64x128xbf16>
    %348 = vector.shape_cast %347 : vector<64x128xbf16> to vector<8x8x128xbf16>
    %c0_163 = arith.constant 0 : index
    %c0_164 = arith.constant 0 : index
    %c0_165 = arith.constant 0 : index
    %349 = vector.load %arg8[%c0_163, %c0_164, %c0_165] : memref<8x8x128xbf16, #tpu.memory_space<vmem>>, vector<8x8x128xbf16>
    tpu.vector_store %arg8[%c0_163, %c0_164, %c0_165], %348 {strides = array<i32>} : memref<8x8x128xbf16, #tpu.memory_space<vmem>>, vector<8x8x128xbf16>,
    return
  }
  func.func @transform_0(%arg0: i32, %arg1: i32) -> (i32, i32, i32) {
    %c0_i32 = arith.constant 0 : i32
    %c0_i32_0 = arith.constant 0 : i32
    return %arg1, %arg0, %c0_i32 : i32, i32, i32
  }
  func.func @transform_1(%arg0: i32, %arg1: i32) -> (i32, i32) {
    %c0_i32 = arith.constant 0 : i32
    %c0_i32_0 = arith.constant 0 : i32
    %c0_i32_1 = arith.constant 0 : i32
    return %c0_i32, %c0_i32_0 : i32, i32
  }
  func.func @transform_2(%arg0: i32, %arg1: i32) -> (i32, i32) {
    %c0_i32 = arith.constant 0 : i32
    %c0_i32_0 = arith.constant 0 : i32
    %c0_i32_1 = arith.constant 0 : i32
    return %c0_i32, %c0_i32_0 : i32, i32
  }
  func.func @transform_3(%arg0: i32, %arg1: i32) -> (i32, i32) {
    %c0_i32 = arith.constant 0 : i32
    %c0_i32_0 = arith.constant 0 : i32
    %c0_i32_1 = arith.constant 0 : i32
    return %c0_i32, %c0_i32_0 : i32, i32
  }
  func.func @transform_4(%arg0: i32, %arg1: i32) -> (i32, i32) {
    %c0_i32 = arith.constant 0 : i32
    %c0_i32_0 = arith.constant 0 : i32
    %c0_i32_1 = arith.constant 0 : i32
    return %c0_i32, %c0_i32_0 : i32, i32
  }
  func.func @transform_5(%arg0: i32, %arg1: i32) -> (i32, i32) {
    %c0_i32 = arith.constant 0 : i32
    %c0_i32_0 = arith.constant 0 : i32
    %c0_i32_1 = arith.constant 0 : i32
    return %c0_i32, %c0_i32_0 : i32, i32
  }
  func.func @transform_6(%arg0: i32, %arg1: i32) -> (i32, i32, i32) {
    %c0_i32 = arith.constant 0 : i32
    %c0_i32_0 = arith.constant 0 : i32
    return %arg1, %arg0, %c0_i32 : i32, i32, i32
  }
}

</mosaic_0001>

<bundles_post_ra>
// kernel: lstm_model_forward.1
= control target key start
LH: loop header
LB: loop body
LE: loop exit
PB: predicated region body
PF: predicated region fallthrough
CT: control target
= control target key end

     0   :  { %v4846_v1 = vmov 0   ;;  %v3903_v38 = vmov 0.0|0.0   ;;  %s4839_s1 = inlined_call_operand.vmem [shape: bf16[128,512], index: 1, kind: input, shape index: {}]   ;;  %s4840_s3 = inlined_call_operand.vmem [shape: bf16[128,512], index: 3, kind: input, shape index: {}]   ;;  %s4841_s0 = inlined_call_operand.vmem [shape: bf16[8,8,128], index: 0, kind: input, shape index: {}]   ;;  %s4842_s2 = inlined_call_operand.vmem [shape: f32[1,512], index: 2, kind: input, shape index: {}]   ;;  %s4843_s4 = inlined_call_operand.vmem [shape: bf16[128,128], index: 4, kind: input, shape index: {}]   ;;  %s4844_s5 = inlined_call_operand.vmem [shape: f32[1,128], index: 5, kind: input, shape index: {}]   ;;  %s4845_s6 = inlined_call_operand.vmem [shape: bf16[8,8,128], index: 6, kind: output, shape index: {}]  }
   0x1   :  { %v3590_v0 = vld [vmem:[%s4839_s1 + $0xe4] ss:$16 sps:$4 sm:$0xff]   ;;  %308 = vmatprep.mubr.bf16.mxu1 %v4846_v1  ;;  %684 = vmatprep.mubr.bf16.mxu0 %v4846_v1  ;;  %v3592_v2 = vld [vmem:[%s4839_s1 + $0xe0] ss:$16 sps:$4 sm:$0xff]   ;;  %v3641_v32 = vld [vmem:[%s4839_s1 + $0xec] ss:$16 sps:$4 sm:$0xff]  }
   0x2   :  { %276 = vmatprep.subr.bf16.mxu1 %v3590_v0  ;;  %v3950_v3 = vld [vmem:[%s4840_s3 + $0xe4] ss:$16 sps:$4 sm:$0xff]   ;;  %v3955_v4 = vld [vmem:[%s4840_s3 + $0xe0] ss:$16 sps:$4 sm:$0xff]   ;;  %v3639_v35 = vld [vmem:[%s4839_s1 + $0xe8] ss:$16 sps:$4 sm:$0xff]  }
   0x3   :  { %277 = vmatpush1.bf16.msra.mxu1 %v3592_v2  ;;  %v3596_v5 = vld [vmem:[%s4839_s1 + $0xc4] ss:$16 sps:$4 sm:$0xff]   ;;  %v3598_v6 = vld [vmem:[%s4839_s1 + $0xc0] ss:$16 sps:$4 sm:$0xff]   ;;  %652 = vmatprep.subr.bf16.mxu0 %v3950_v3  ;;  %v3644_v36 = vld [vmem:[%s4839_s1 + $0xcc] ss:$16 sps:$4 sm:$0xff]  }
   0x4   :  { %v3967_v7 = vld [vmem:[%s4840_s3 + $0xc4] ss:$16 sps:$4 sm:$0xff]   ;;  %653 = vmatpush1.bf16.msra.mxu0 %v3955_v4  ;;  %278 = vmatprep.subr.bf16.mxu1 %v3596_v5  ;;  %v3973_v8 = vld [vmem:[%s4840_s3 + $0xc0] ss:$16 sps:$4 sm:$0xff]   ;;  %v3642_v37 = vld [vmem:[%s4839_s1 + $0xc8] ss:$16 sps:$4 sm:$0xff]  }
   0x5   :  { %654 = vmatprep.subr.bf16.mxu0 %v3967_v7  ;;  %v3602_v9 = vld [vmem:[%s4839_s1 + $0xa4] ss:$16 sps:$4 sm:$0xff]   ;;  %v3604_v10 = vld [vmem:[%s4839_s1 + $0xa0] ss:$16 sps:$4 sm:$0xff]   ;;  %v3648_v39 = vld [vmem:[%s4839_s1 + $0xac] ss:$16 sps:$4 sm:$0xff]  }
   0x6   :  { %v3985_v11 = vld [vmem:[%s4840_s3 + $0xa4] ss:$16 sps:$4 sm:$0xff]   ;;  %v3994_v13 = vld [vmem:[%s4840_s3 + $0xa0] ss:$16 sps:$4 sm:$0xff]   ;;  %v3645_v40 = vld [vmem:[%s4841_s0 + $0x8] sm:$0xff]  }
   0x7   :  { %279 = vmatpush1.bf16.msra.mxu1 %v3598_v6  ;;  %v3608_v12 = vld [vmem:[%s4839_s1 + $0x84] ss:$16 sps:$4 sm:$0xff]   ;;  %v3610_v15 = vld [vmem:[%s4839_s1 + $0x80] ss:$16 sps:$4 sm:$0xff]   ;;  %v3646_v41 = vld [vmem:[%s4839_s1 + $0xa8] ss:$16 sps:$4 sm:$0xff]  }
   0x8   :  { %280 = vmatprep.subr.bf16.mxu1 %v3602_v9  ;;  %655 = vmatpush1.bf16.msra.mxu0 %v3973_v8  ;;  %v4000_v14 = vld [vmem:[%s4840_s3 + $0x84] ss:$16 sps:$4 sm:$0xff]   ;;  %v4012_v17 = vld [vmem:[%s4840_s3 + $0x80] ss:$16 sps:$4 sm:$0xff]   ;;  %v3651_v42 = vld [vmem:[%s4839_s1 + $0x8c] ss:$16 sps:$4 sm:$0xff]  }
   0x9   :  { %656 = vmatprep.subr.bf16.mxu0 %v3985_v11  ;;  %v3614_v16 = vld [vmem:[%s4839_s1 + $0x64] ss:$16 sps:$4 sm:$0xff]   ;;  %v3616_v19 = vld [vmem:[%s4839_s1 + $0x60] ss:$16 sps:$4 sm:$0xff]   ;;  %v3649_v43 = vld [vmem:[%s4839_s1 + $0x88] ss:$16 sps:$4 sm:$0xff]  }
   0xa   :  { %v4018_v18 = vld [vmem:[%s4840_s3 + $0x64] ss:$16 sps:$4 sm:$0xff]   ;;  %v4030_v21 = vld [vmem:[%s4840_s3 + $0x60] ss:$16 sps:$4 sm:$0xff]   ;;  %v3655_v44 = vld [vmem:[%s4839_s1 + $0x6c] ss:$16 sps:$4 sm:$0xff]  }
   0xb   :  { %281 = vmatpush1.bf16.msra.mxu1 %v3604_v10  ;;  %v3620_v20 = vld [vmem:[%s4839_s1 + $0x44] ss:$16 sps:$4 sm:$0xff]   ;;  %v3622_v23 = vld [vmem:[%s4839_s1 + $0x40] ss:$16 sps:$4 sm:$0xff]   ;;  %v3653_v46 = vld [vmem:[%s4839_s1 + $0x68] ss:$16 sps:$4 sm:$0xff]   ;;  %v72_v10 = vlaneseq }
   0xc   :  { %282 = vmatprep.subr.bf16.mxu1 %v3608_v12  ;;  %657 = vmatpush1.bf16.msra.mxu0 %v3994_v13  ;;  %v4036_v22 = vld [vmem:[%s4840_s3 + $0x44] ss:$16 sps:$4 sm:$0xff]   ;;  %v4048_v25 = vld [vmem:[%s4840_s3 + $0x40] ss:$16 sps:$4 sm:$0xff]   ;;  %v3658_v47 = vld [vmem:[%s4839_s1 + $0x4c] ss:$16 sps:$4 sm:$0xff]  }
   0xd   :  { %658 = vmatprep.subr.bf16.mxu0 %v4000_v14  ;;  %v3626_v24 = vld [vmem:[%s4839_s1 + $0x24] ss:$16 sps:$4 sm:$0xff]   ;;  %v3628_v27 = vld [vmem:[%s4839_s1 + $0x20] ss:$16 sps:$4 sm:$0xff]   ;;  %v3656_v48 = vld [vmem:[%s4839_s1 + $0x48] ss:$16 sps:$4 sm:$0xff]  }
   0xe   :  { %v4054_v26 = vld [vmem:[%s4840_s3 + $0x24] ss:$16 sps:$4 sm:$0xff]   ;;  %v4066_v29 = vld [vmem:[%s4840_s3 + $0x20] ss:$16 sps:$4 sm:$0xff]   ;;  %v3662_v49 = vld [vmem:[%s4839_s1 + $0x2c] ss:$16 sps:$4 sm:$0xff]  }
   0xf   :  { %283 = vmatpush1.bf16.msra.mxu1 %v3610_v15  ;;  %v3632_v28 = vld [vmem:[%s4839_s1 + $0x4] ss:$16 sps:$4 sm:$0xff]   ;;  %v3634_v31 = vld [vmem:[%s4839_s1] ss:$16 sps:$4 sm:$0xff]   ;;  %v3659_v50 = vld [vmem:[%s4841_s0 + $0x18] sm:$0xff]   ;;  %v73_v12 = vshrl.u32 %v72_v10, 7 }
  0x10   :  { %284 = vmatprep.subr.bf16.mxu1 %v3614_v16  ;;  %659 = vmatpush1.bf16.msra.mxu0 %v4012_v17  ;;  %v4072_v30 = vld [vmem:[%s4840_s3 + $0x4] ss:$16 sps:$4 sm:$0xff]   ;;  %v4084_v33 = vld [vmem:[%s4840_s3] ss:$16 sps:$4 sm:$0xff]   ;;  %v3660_v51 = vld [vmem:[%s4839_s1 + $0x28] ss:$16 sps:$4 sm:$0xff]  }
  0x11   :  { %660 = vmatprep.subr.bf16.mxu0 %v4018_v18  ;;  %v4090_v34 = vld [vmem:[%s4841_s0] sm:$0xff]   ;;  %v3652_v45 = vld [vmem:[%s4841_s0 + $0x10] sm:$0xff]   ;;  %v3665_v52 = vld [vmem:[%s4839_s1 + $0xc] ss:$16 sps:$4 sm:$0xff]   ;;  %v74_v15 = vsub.s32 0, %v73_v12 }
  0x12   :  { %v3663_v53 = vld [vmem:[%s4839_s1 + $0x8] ss:$16 sps:$4 sm:$0xff]   ;;  %v4168_v54 = vld [vmem:[%s4840_s3 + $0xec] ss:$16 sps:$4 sm:$0xff]   ;;  %v70_v16 = vld [vmem:[%s4842_s2] sm:$0xf] }
  0x13   :  { %285 = vmatpush1.bf16.msra.mxu1 %v3616_v19  ;;  %v4177_v55 = vld [vmem:[%s4840_s3 + $0xe8] ss:$16 sps:$4 sm:$0xff]   ;;  %v4183_v56 = vld [vmem:[%s4840_s3 + $0xcc] ss:$16 sps:$4 sm:$0xff]  }
  0x14   :  { %286 = vmatprep.subr.bf16.mxu1 %v3620_v20  ;;  %661 = vmatpush1.bf16.msra.mxu0 %v4030_v21  ;;  %v4192_v57 = vld [vmem:[%s4840_s3 + $0xc8] ss:$16 sps:$4 sm:$0xff]   ;;  %v4199_v58 = vld [vmem:[%s4840_s3 + $0xac] ss:$16 sps:$4 sm:$0xff]   ;;  %v78_v20 = vsub.s32 1, %v73_v12 }
  0x15   :  { %662 = vmatprep.subr.bf16.mxu0 %v4036_v22  ;;  %v4205_v59 = vld [vmem:[%s4840_s3 + $0xa8] ss:$16 sps:$4 sm:$0xff]   ;;  %v4211_v60 = vld [vmem:[%s4840_s3 + $0x8c] ss:$16 sps:$4 sm:$0xff]  }
  0x16   :  { %v4217_v61 = vld [vmem:[%s4840_s3 + $0x88] ss:$16 sps:$4 sm:$0xff]   ;;  %v4224_v62 = vld [vmem:[%s4840_s3 + $0x6c] ss:$16 sps:$4 sm:$0xff]  }
  0x17   :  { %287 = vmatpush1.bf16.msra.mxu1 %v3622_v23  ;;  %v4230_v63 = vld [vmem:[%s4840_s3 + $0x68] ss:$16 sps:$4 sm:$0xff]   ;;  %v4236_v0 = vld [vmem:[%s4840_s3 + $0x4c] ss:$16 sps:$4 sm:$0xff]  }
  0x18   :  { %288 = vmatprep.subr.bf16.mxu1 %v3626_v24  ;;  %663 = vmatpush1.bf16.msra.mxu0 %v4048_v25  ;;  %v4242_v2 = vld [vmem:[%s4840_s3 + $0x48] ss:$16 sps:$4 sm:$0xff]   ;;  %v4261_v6 = vld [vmem:[%s4840_s3 + $0xc] ss:$16 sps:$4 sm:$0xff]  }
  0x19   :  { %664 = vmatprep.subr.bf16.mxu0 %v4054_v26  ;;  %v4255_v5 = vld [vmem:[%s4840_s3 + $0x28] ss:$16 sps:$4 sm:$0xff]  }
  0x1a   :  { %v4267_v9 = vld [vmem:[%s4840_s3 + $0x8] ss:$16 sps:$4 sm:$0xff]  }
  0x1b   :  { %289 = vmatpush1.bf16.msra.mxu1 %v3628_v27  ;;  %v75_v27 = vrot.slane %v70_v16, %v74_v15 }
  0x1c   :  { %290 = vmatprep.subr.bf16.mxu1 %v3632_v28  ;;  %665 = vmatpush1.bf16.msra.mxu0 %v4066_v29 }
  0x1d   :  { %666 = vmatprep.subr.bf16.mxu0 %v4072_v30 }
  0x1f   :  { %291 = vmatpush1.bf16.msra.mxu1 %v3634_v31 }
  0x20   :  { %349 = vmatprep.subr.bf16.mxu1 %v3641_v32  ;;  %667 = vmatpush1.bf16.msra.mxu0 %v4084_v33  ;;  %v79_v32 = vrot.slane %v70_v16, %v78_v20 }
  0x21   :  { %966 = vmatprep.subr.bf16.mxu0 %v3950_v3 }
  0x22   :  { %309 = vmatmul.mubr.bf16.vlgmr.msra.gmra.mxu1 %v4090_v34 }
  0x23   :  { %350 = vmatpush1.bf16.msra.mxu1 %v3639_v35  ;;  %318 = vmatprep.mubr.bf16.mxu1 %v4846_v1 }
  0x24   :  { %685 = vmatmul.mubr.bf16.vlgmr.msra.gmra.mxu0 %v3903_v38  ;;  %351 = vmatprep.subr.bf16.mxu1 %v3644_v36 }
  0x25   :  { %967 = vmatpush1.bf16.msra.mxu0 %v3955_v4  ;;  %998 = vmatprep.mubr.bf16.mxu0 %v4846_v1 }
  0x26   :  { %968 = vmatprep.subr.bf16.mxu0 %v3967_v7 }
  0x27   :  { %352 = vmatpush1.bf16.msra.mxu1 %v3642_v37 }
  0x28   :  { %353 = vmatprep.subr.bf16.mxu1 %v3648_v39 }
  0x29   :  { %969 = vmatpush1.bf16.msra.mxu0 %v3973_v8 }
  0x2a   :  { %319 = vmatmul.mubr.bf16.gmra.mxu1 %v3645_v40  ;;  %970 = vmatprep.subr.bf16.mxu0 %v3985_v11 }
  0x2b   :  { %354 = vmatpush1.bf16.msra.mxu1 %v3646_v41  ;;  %328 = vmatprep.mubr.bf16.mxu1 %v4846_v1 }
  0x2c   :  { %355 = vmatprep.subr.bf16.mxu1 %v3651_v42 }
  0x2d   :  { %971 = vmatpush1.bf16.msra.mxu0 %v3994_v13 }
  0x2e   :  { %972 = vmatprep.subr.bf16.mxu0 %v4000_v14 }
  0x2f   :  { %356 = vmatpush1.bf16.msra.mxu1 %v3649_v43 }
  0x30   :  { %357 = vmatprep.subr.bf16.mxu1 %v3655_v44 }
  0x31   :  { %973 = vmatpush1.bf16.msra.mxu0 %v4012_v17 }
  0x32   :  { %329 = vmatmul.mubr.bf16.gmra.mxu1 %v3652_v45  ;;  %974 = vmatprep.subr.bf16.mxu0 %v4018_v18 }
  0x33   :  { %358 = vmatpush1.bf16.msra.mxu1 %v3653_v46  ;;  %338 = vmatprep.mubr.bf16.mxu1 %v4846_v1 }
  0x34   :  { %359 = vmatprep.subr.bf16.mxu1 %v3658_v47 }
  0x35   :  { %975 = vmatpush1.bf16.msra.mxu0 %v4030_v21 }
  0x36   :  { %976 = vmatprep.subr.bf16.mxu0 %v4036_v22 }
  0x37   :  { %360 = vmatpush1.bf16.msra.mxu1 %v3656_v48 }
  0x38   :  { %361 = vmatprep.subr.bf16.mxu1 %v3662_v49 }
  0x39   :  { %977 = vmatpush1.bf16.msra.mxu0 %v4048_v25 }
  0x3a   :  { %339 = vmatmul.mubr.bf16.gmra.mxu1 %v3659_v50  ;;  %978 = vmatprep.subr.bf16.mxu0 %v4054_v26 }
  0x3b   :  { %362 = vmatpush1.bf16.msra.mxu1 %v3660_v51  ;;  %381 = vmatprep.mubr.bf16.mxu1 %v4846_v1 }
  0x3c   :  { %363 = vmatprep.subr.bf16.mxu1 %v3665_v52 }
  0x3d   :  { %979 = vmatpush1.bf16.msra.mxu0 %v4066_v29 }
  0x3e   :  { %980 = vmatprep.subr.bf16.mxu0 %v4072_v30 }
  0x3f   :  { %364 = vmatpush1.bf16.msra.mxu1 %v3663_v53 }
  0x40   :  { %693 = vmatprep.subr.bf16.mxu1 %v4168_v54 }
  0x41   :  { %981 = vmatpush1.bf16.msra.mxu0 %v4084_v33 }
  0x42   :  { %382 = vmatmul.mubr.bf16.vlgmr.msra.gmra.mxu1 %v4090_v34  ;;  %1281 = vmatprep.subr.bf16.mxu0 %v3950_v3  ;;  %v4249_v3 = vld [vmem:[%s4840_s3 + $0x2c] ss:$16 sps:$4 sm:$0xff]  }
  0x43   :  { %694 = vmatpush1.bf16.msra.mxu1 %v4177_v55  ;;  %391 = vmatprep.mubr.bf16.mxu1 %v4846_v1 }
  0x44   :  { %695 = vmatprep.subr.bf16.mxu1 %v4183_v56 }
  0x47   :  { %696 = vmatpush1.bf16.msra.mxu1 %v4192_v57 }
  0x48   :  { %697 = vmatprep.subr.bf16.mxu1 %v4199_v58 }
  0x4a   :  { %392 = vmatmul.mubr.bf16.gmra.mxu1 %v3645_v40 }
  0x4b   :  { %698 = vmatpush1.bf16.msra.mxu1 %v4205_v59  ;;  %401 = vmatprep.mubr.bf16.mxu1 %v4846_v1 }
  0x4c   :  { %699 = vmatprep.subr.bf16.mxu1 %v4211_v60 }
  0x4f   :  { %700 = vmatpush1.bf16.msra.mxu1 %v4217_v61 }
  0x50   :  { %701 = vmatprep.subr.bf16.mxu1 %v4224_v62 }
  0x52   :  { %402 = vmatmul.mubr.bf16.gmra.mxu1 %v3652_v45 }
  0x53   :  { %702 = vmatpush1.bf16.msra.mxu1 %v4230_v63  ;;  %411 = vmatprep.mubr.bf16.mxu1 %v4846_v1 }
  0x54   :  { %703 = vmatprep.subr.bf16.mxu1 %v4236_v0 }
  0x57   :  { %704 = vmatpush1.bf16.msra.mxu1 %v4242_v2 }
  0x58   :  { %705 = vmatprep.subr.bf16.mxu1 %v4249_v3 }
  0x5a   :  { %412 = vmatmul.mubr.bf16.gmra.mxu1 %v3659_v50 }
  0x5b   :  { %706 = vmatpush1.bf16.msra.mxu1 %v4255_v5  ;;  %725 = vmatprep.mubr.bf16.mxu1 %v4846_v1 }
  0x5c   :  { %707 = vmatprep.subr.bf16.mxu1 %v4261_v6 }
  0x5f   :  { %708 = vmatpush1.bf16.msra.mxu1 %v4267_v9 }
  0x60   :  { %1007 = vmatprep.subr.bf16.mxu1 %v4168_v54 }
  0x62   :  { %726 = vmatmul.mubr.bf16.vlgmr.msra.gmra.mxu1 %v3903_v38 }
  0x63   :  { %1008 = vmatpush1.bf16.msra.mxu1 %v4177_v55  ;;  %1039 = vmatprep.mubr.bf16.mxu1 %v4846_v1 }
  0x64   :  { %1009 = vmatprep.subr.bf16.mxu1 %v4183_v56 }
  0x67   :  { %1010 = vmatpush1.bf16.msra.mxu1 %v4192_v57 }
  0x68   :  { %1011 = vmatprep.subr.bf16.mxu1 %v4199_v58 }
  0x6b   :  { %1012 = vmatpush1.bf16.msra.mxu1 %v4205_v59 }
  0x6c   :  { %1013 = vmatprep.subr.bf16.mxu1 %v4211_v60 }
  0x6f   :  { %1014 = vmatpush1.bf16.msra.mxu1 %v4217_v61 }
  0x70   :  { %1015 = vmatprep.subr.bf16.mxu1 %v4224_v62 }
  0x73   :  { %1016 = vmatpush1.bf16.msra.mxu1 %v4230_v63 }
  0x74   :  { %1017 = vmatprep.subr.bf16.mxu1 %v4236_v0 }
  0x77   :  { %1018 = vmatpush1.bf16.msra.mxu1 %v4242_v2 }
  0x78   :  { %1019 = vmatprep.subr.bf16.mxu1 %v4249_v3 }
  0x7b   :  { %1020 = vmatpush1.bf16.msra.mxu1 %v4255_v5 }
  0x7c   :  { %1021 = vmatprep.subr.bf16.mxu1 %v4261_v6 }
  0x7f   :  { %1022 = vmatpush1.bf16.msra.mxu1 %v4267_v9 }
  0x80   :  { %1322 = vmatprep.subr.bf16.mxu1 %v4168_v54 }
  0xe2   :  { %v310_v19 = vpop.f32.mrf.mxu1 }
  0xe4   :  { %v312_v23 = vpop.f32.mrf.mxu1  ;;  %v686_v24 = vpop.f32.mrf.mxu0 }
  0xe6   :  { %v314_v28 = vpop.f32.mrf.mxu1  ;;  %v688_v31 = vpop.f32.mrf.mxu0 }
  0xe7   :  { %v4294_v34 = vadd.f32 %v314_v28, %v75_v27 }
  0xe8   :  { %v316_v35 = vpop.f32.mrf.mxu1  ;;  %v690_v36 = vpop.f32.mrf.mxu0 }
  0xe9   :  { %v4296_v37 = vadd.f32 %v316_v35, %v79_v32 }
  0xea   :  { %v320_v38 = vpop.f32.mrf.mxu1  ;;  %v691_v39 = vpop.f32.mrf.mxu0 }
  0xeb   :  { %v4298_v40 = vadd.f32 %v320_v38, %v75_v27 }
  0xec   :  { %v322_v41 = vpop.f32.mrf.mxu1 }
  0xed   :  { %v4300_v42 = vadd.f32 %v322_v41, %v79_v32 }
  0xee   :  { %v324_v43 = vpop.f32.mrf.mxu1 }
  0xef   :  { %v4302_v44 = vadd.f32 %v324_v43, %v75_v27  ;;  %v82_v43 = vsub.s32 2, %v73_v12 }
  0xf0   :  { %v326_v45 = vpop.f32.mrf.mxu1 }
  0xf1   :  { %v4304_v46 = vadd.f32 %v326_v45, %v79_v32 }
  0xf2   :  { %v330_v47 = vpop.f32.mrf.mxu1 }
  0xf3   :  { %v4306_v48 = vadd.f32 %v330_v47, %v75_v27  ;;  %v313_v47 = vadd.f32 %v312_v23, %v79_v32 }
  0xf4   :  { %v332_v49 = vpop.f32.mrf.mxu1 }
  0xf5   :  { %4848 = vst [vmem:[#allocation6_spill] sm:$0xff] %v4306_v48  ;;  %v4308_v50 = vadd.f32 %v332_v49, %v79_v32  ;;  %v86_v49 = vsub.s32 3, %v73_v12 }
  0xf6   :  { %v334_v51 = vpop.f32.mrf.mxu1 }
  0xf7   :  { %4849 = vst [vmem:[#allocation7_spill] sm:$0xff] %v4308_v50  ;;  %v4310_v52 = vadd.f32 %v334_v51, %v75_v27  ;;  %v311_v51 = vadd.f32 %v310_v19, %v75_v27 }
  0xf8   :  { %v336_v53 = vpop.f32.mrf.mxu1 }
  0xf9   :  { %4850 = vst [vmem:[#allocation8_spill] sm:$0xff] %v4310_v52  ;;  %v4312_v10 = vadd.f32 %v336_v53, %v79_v32  ;;  %v83_v53 = vrot.slane %v70_v16, %v82_v43  ;;  %v735_v52 = vadd.f32 %v688_v31, %v313_v47 }
  0xfa   :  { %v340_v15 = vpop.f32.mrf.mxu1 }
  0xfb   :  { %4851 = vst [vmem:[#allocation9_spill] sm:$0xff] %v4312_v10  ;;  %v4314_v20 = vadd.f32 %v340_v15, %v75_v27  ;;  %v87_v15 = vrot.slane %v70_v16, %v86_v49 }
  0xfc   :  { %v342_v28 = vpop.f32.mrf.mxu1 }
  0xfd   :  { %4852 = vst [vmem:[#allocation10_spill] sm:$0xff] %v4314_v20  ;;  %v4316_v35 = vadd.f32 %v342_v28, %v79_v32  ;;  %v734_v28 = vadd.f32 %v686_v24, %v311_v51 }
  0xfe   :  { %v344_v36 = vpop.f32.mrf.mxu1 }
  0xff   :  { %4853 = vst [vmem:[#allocation11_spill] sm:$0xff] %v4316_v35  ;;  %v4318_v38 = vadd.f32 %v344_v36, %v75_v27 }
 0x100   :  { %v346_v39 = vpop.f32.mrf.mxu1 }
 0x101   :  { %4854 = vst [vmem:[#allocation12_spill] sm:$0xff] %v4318_v38  ;;  %v4320_v41 = vadd.f32 %v346_v39, %v79_v32  ;;  %v3253_v38 = vmul.f32 -1.442695, %v735_v52 }
 0x102   :  { %v383_v45 = vpop.f32.mrf.mxu1 }
 0x103   :  { %4855 = vst [vmem:[#allocation13_spill] sm:$0xff] %v4320_v41  ;;  %v3252_v41 = vmul.f32 -1.442695, %v734_v28  ;;  %3774 = vpow2.f32 %v3253_v38 }
 0x104   :  { %v385_v1 = vpop.f32.mrf.mxu1 }
 0x105   :  { %3776 = vpow2.f32 %v3252_v41 }
 0x106   :  { %v387_v10 = vpop.f32.mrf.mxu1 }
 0x107   :  { %v4322_v20 = vadd.f32 %v387_v10, %v83_v53 }
 0x108   :  { %v389_v35 = vpop.f32.mrf.mxu1 }
 0x109   :  { %v4324_v50 = vadd.f32 %v389_v35, %v87_v15 }
 0x10a   :  { %v393_v36 = vpop.f32.mrf.mxu1 }
 0x10b   :  { %v4326_v39 = vadd.f32 %v393_v36, %v83_v53 }
 0x10c   :  { %v395_v48 = vpop.f32.mrf.mxu1 }
 0x10d   :  { %v4328_v23 = vadd.f32 %v395_v48, %v87_v15 }
 0x10e   :  { %v397_v12 = vpop.f32.mrf.mxu1 }
 0x10f   :  { %v4330_v19 = vadd.f32 %v397_v12, %v83_v53 }
 0x110   :  { %v399_v16 = vpop.f32.mrf.mxu1  ;;  %v3775_v49 = vpop.eup %3774 }
 0x111   :  { %4856 = vst [vmem:[#allocation14_spill] sm:$0xff] %v4330_v19  ;;  %v4332_v27 = vadd.f32 %v399_v16, %v87_v15  ;;  %v747_v12 = vadd.f32 1.0, %v3775_v49 }
 0x112   :  { %v403_v24 = vpop.f32.mrf.mxu1  ;;  %v3777_v51 = vpop.eup %3776 }
 0x113   :  { %v4334_v31 = vadd.f32 %v403_v24, %v83_v53  ;;  %v741_v24 = vadd.f32 1.0, %v3777_v51  ;;  %3778 = vrcp.f32 %v747_v12 }
 0x114   :  { %v405_v32 = vpop.f32.mrf.mxu1 }
 0x115   :  { %4857 = vst [vmem:[#allocation15_spill] sm:$0xff] %v4334_v31  ;;  %v4336_v10 = vadd.f32 %v405_v32, %v87_v15  ;;  %v384_v31 = vadd.f32 %v383_v45, %v83_v53  ;;  %3780 = vrcp.f32 %v741_v24 }
 0x116   :  { %v407_v52 = vpop.f32.mrf.mxu1 }
 0x117   :  { %4858 = vst [vmem:[#allocation16_spill] sm:$0xff] %v4336_v10  ;;  %v4338_v35 = vadd.f32 %v407_v52, %v83_v53 }
 0x118   :  { %v409_v43 = vpop.f32.mrf.mxu1 }
 0x119   :  { %4859 = vst [vmem:[#allocation17_spill] sm:$0xff] %v4338_v35  ;;  %v4340_v48 = vadd.f32 %v409_v43, %v87_v15  ;;  %v386_v43 = vadd.f32 %v385_v1, %v87_v15 }
 0x11a   :  { %v413_v47 = vpop.f32.mrf.mxu1 }
 0x11b   :  { %4860 = vst [vmem:[#allocation18_spill] sm:$0xff] %v4340_v48  ;;  %v4342_v38 = vadd.f32 %v413_v47, %v83_v53 }
 0x11c   :  { %v415_v41 = vpop.f32.mrf.mxu1 }
 0x11d   :  { %4861 = vst [vmem:[#allocation19_spill] sm:$0xff] %v4342_v38  ;;  %v4344_v28 = vadd.f32 %v415_v41, %v87_v15 }
 0x11e   :  { %v417_v36 = vpop.f32.mrf.mxu1 }
 0x11f   :  { %4862 = vst [vmem:[#allocation20_spill] sm:$0xff] %v4344_v28  ;;  %v4346_v16 = vadd.f32 %v417_v36, %v83_v53 }
 0x120   :  { %v419_v32 = vpop.f32.mrf.mxu1  ;;  %v3779_v49 = vpop.eup %3778 }
 0x121   :  { %4863 = vst [vmem:[#allocation21_spill] sm:$0xff] %v4346_v16  ;;  %v4348_v52 = vadd.f32 %v419_v32, %v87_v15  ;;  %v758_v51 = vmul.f32 0.0, %v3779_v49 }
 0x122   :  { %v727_v35 = vpop.f32.mrf.mxu1  ;;  %v3781_v36 = vpop.eup %3780 }
 0x123   :  { %v736_v48 = vadd.f32 %v727_v35, %v384_v31 }
 0x124   :  { %v729_v47 = vpop.f32.mrf.mxu1 }
 0x125   :  { %3782 = vtanh.f32 %v736_v48  ;;  %v737_v38 = vadd.f32 %v729_v47, %v386_v43 }
 0x126   :  { %v731_v10 = vpop.f32.mrf.mxu1 }
 0x127   :  { %v3254_v41 = vmul.f32 -1.442695, %v737_v38 }
 0x128   :  { %v732_v28 = vpop.f32.mrf.mxu1 }
 0x129   :  { %3784 = vpow2.f32 %v3254_v41 }
 0x132   :  { %v3783_v16 = vpop.eup %3782 }
 0x133   :  { %v759_v19 = vmul.f32 %v3783_v16, %v3781_v36  ;;  %v4503_v36 = vld [vmem:[%s4840_s3] ss:$16 sps:$4 sm:$0xff]  }
 0x135   :  { %v4350_v45 = vadd.f32 %v759_v19, %v758_v51  ;;  %v4864_v19 = vmov 0  }
 0x136   :  { %v3785_v53 = vpop.eup %3784 }
 0x137   :  { %v754_v32 = vadd.f32 1.0, %v3785_v53  ;;  %3786 = vtanh.f32 %v4350_v45 }
 0x139   :  { %3788 = vrcp.f32 %v754_v32 }
 0x144   :  { %v3787_v1 = vpop.eup %3786 }
 0x146   :  { %v3789_v15 = vpop.eup %3788 }
 0x147   :  { %v762_v31 = vmul.f32 %v3789_v15, %v3787_v1 }
 0x149   :  { %v765_v35 = vpack.c.bf16 %v762_v31, %v762_v31 }
 0x14b   :  { %766 = vst [vmem:[#allocation5] sm:$0xf] %v765_v35  ;;  %999 = vmatmul.mubr.bf16.vlgmr.msra.gmra.mxu0 %v765_v35  ;;  %1040 = vmatmul.mubr.bf16.vlgmr.msra.gmra.mxu1 %v765_v35 }
 0x14c   :  { %1282 = vmatpush1.bf16.msra.mxu0 %v3955_v4  ;;  %1323 = vmatpush1.bf16.msra.mxu1 %v4177_v55 }
 0x14d   :  { %1283 = vmatprep.subr.bf16.mxu0 %v3967_v7  ;;  %1324 = vmatprep.subr.bf16.mxu1 %v4183_v56 }
 0x14e   :  { %1313 = vmatprep.mubr.bf16.mxu0 %v4864_v19  ;;  %1354 = vmatprep.mubr.bf16.mxu1 %v4864_v19 }
 0x150   :  { %1284 = vmatpush1.bf16.msra.mxu0 %v3973_v8  ;;  %1325 = vmatpush1.bf16.msra.mxu1 %v4192_v57 }
 0x151   :  { %1285 = vmatprep.subr.bf16.mxu0 %v3985_v11  ;;  %1326 = vmatprep.subr.bf16.mxu1 %v4199_v58 }
 0x154   :  { %1286 = vmatpush1.bf16.msra.mxu0 %v3994_v13  ;;  %1327 = vmatpush1.bf16.msra.mxu1 %v4205_v59 }
 0x155   :  { %1287 = vmatprep.subr.bf16.mxu0 %v4000_v14  ;;  %1328 = vmatprep.subr.bf16.mxu1 %v4211_v60 }
 0x158   :  { %1288 = vmatpush1.bf16.msra.mxu0 %v4012_v17  ;;  %1329 = vmatpush1.bf16.msra.mxu1 %v4217_v61 }
 0x159   :  { %1289 = vmatprep.subr.bf16.mxu0 %v4018_v18  ;;  %1330 = vmatprep.subr.bf16.mxu1 %v4224_v62 }
 0x15c   :  { %1290 = vmatpush1.bf16.msra.mxu0 %v4030_v21  ;;  %1331 = vmatpush1.bf16.msra.mxu1 %v4230_v63 }
 0x15d   :  { %1291 = vmatprep.subr.bf16.mxu0 %v4036_v22  ;;  %1332 = vmatprep.subr.bf16.mxu1 %v4236_v0 }
 0x160   :  { %1292 = vmatpush1.bf16.msra.mxu0 %v4048_v25  ;;  %1333 = vmatpush1.bf16.msra.mxu1 %v4242_v2 }
 0x161   :  { %1293 = vmatprep.subr.bf16.mxu0 %v4054_v26  ;;  %1334 = vmatprep.subr.bf16.mxu1 %v4249_v3 }
 0x164   :  { %1294 = vmatpush1.bf16.msra.mxu0 %v4066_v29  ;;  %1335 = vmatpush1.bf16.msra.mxu1 %v4255_v5 }
 0x165   :  { %1295 = vmatprep.subr.bf16.mxu0 %v4072_v30  ;;  %1336 = vmatprep.subr.bf16.mxu1 %v4261_v6 }
 0x168   :  { %1296 = vmatpush1.bf16.msra.mxu0 %v4084_v33  ;;  %1337 = vmatpush1.bf16.msra.mxu1 %v4267_v9 }
 0x169   :  { %1637 = vmatprep.subr.bf16.mxu1 %v4168_v54 }
 0x20b   :  { %v1000_v4 = vpop.f32.mrf.mxu0  ;;  %v1041_v7 = vpop.f32.mrf.mxu1 }
 0x20c   :  { %v1048_v8 = vadd.f32 %v1000_v4, %v4294_v34  ;;  %v1050_v30 = vadd.f32 %v1041_v7, %v4322_v20 }
 0x20d   :  { %v1002_v11 = vpop.f32.mrf.mxu0  ;;  %v1043_v13 = vpop.f32.mrf.mxu1 }
 0x20e   :  { %v3287_v14 = vmul.f32 -1.442695, %v1048_v8  ;;  %v1049_v17 = vadd.f32 %v1002_v11, %v4296_v37  ;;  %v1051_v29 = vadd.f32 %v1043_v13, %v4324_v50 }
 0x20f   :  { %v1004_v18 = vpop.f32.mrf.mxu0  ;;  %v1045_v21 = vpop.f32.mrf.mxu1 }
 0x210   :  { %3790 = vpow2.f32 %v3287_v14  ;;  %v3288_v22 = vmul.f32 -1.442695, %v1049_v17  ;;  %v3289_v33 = vmul.f32 -1.442695, %v1051_v29 }
 0x211   :  { %v1005_v25 = vpop.f32.mrf.mxu0  ;;  %v1046_v26 = vpop.f32.mrf.mxu1 }
 0x212   :  { %3792 = vpow2.f32 %v3288_v22 }
 0x213   :  { %3794 = vtanh.f32 %v1050_v30 }
 0x214   :  { %3796 = vpow2.f32 %v3289_v33 }
 0x21d   :  { %v3791_v54 = vpop.eup %3790 }
 0x21e   :  { %v1055_v10 = vadd.f32 1.0, %v3791_v54 }
 0x21f   :  { %v3793_v34 = vpop.eup %3792 }
 0x220   :  { %3798 = vrcp.f32 %v1055_v10  ;;  %v1061_v48 = vadd.f32 1.0, %v3793_v34  ;;  %v3795_v37 = vpop.eup %3794 }
 0x221   :  { %v3797_v38 = vpop.eup %3796 }
 0x222   :  { %3800 = vrcp.f32 %v1061_v48  ;;  %v1068_v24 = vadd.f32 1.0, %v3797_v38  ;;  %v4542_v38 = vld [vmem:[%s4840_s3 + $0xe8] ss:$16 sps:$4 sm:$0xff]  }
 0x224   :  { %3802 = vrcp.f32 %v1068_v24  ;;  %v4566_v24 = vld [vmem:[%s4840_s3 + $0xa8] ss:$16 sps:$4 sm:$0xff]  }
 0x22d   :  { %v3799_v28 = vpop.eup %3798 }
 0x22e   :  { %v1073_v12 = vmul.f32 %v3799_v28, %v3795_v37  ;;  %v4537_v37 = vld [vmem:[%s4840_s3 + $0xec] ss:$16 sps:$4 sm:$0xff]  }
 0x22f   :  { %v3801_v16 = vpop.eup %3800  ;;  %v4549_v28 = vld [vmem:[%s4840_s3 + $0xcc] ss:$16 sps:$4 sm:$0xff]  }
 0x230   :  { %v1072_v43 = vmul.f32 %v3801_v16, %v4350_v45  ;;  %v4561_v16 = vld [vmem:[%s4840_s3 + $0xac] ss:$16 sps:$4 sm:$0xff]  }
 0x231   :  { %v3803_v20 = vpop.eup %3802 }
 0x232   :  { %v4391_v50 = vadd.f32 %v1073_v12, %v1072_v43  ;;  %v4554_v12 = vld [vmem:[%s4840_s3 + $0xc8] ss:$16 sps:$4 sm:$0xff]   ;;  %v4573_v43 = vld [vmem:[%s4840_s3 + $0x8c] ss:$16 sps:$4 sm:$0xff]  }
 0x234   :  { %3804 = vtanh.f32 %v4391_v50 }
 0x241   :  { %v3805_v47 = vpop.eup %3804 }
 0x242   :  { %v1076_v41 = vmul.f32 %v3805_v47, %v3803_v20  ;;  %v4583_v20 = vld [vmem:[%s4840_s3 + $0x6c] ss:$16 sps:$4 sm:$0xff]   ;;  %v4590_v47 = vld [vmem:[%s4840_s3 + $0x68] ss:$16 sps:$4 sm:$0xff]  }
 0x244   :  { %v1079_v49 = vpack.c.bf16 %v1076_v41, %v1076_v41  ;;  %v4596_v41 = vld [vmem:[%s4840_s3 + $0x4c] ss:$16 sps:$4 sm:$0xff]  }
 0x246   :  { %1081 = vst [vmem:[#allocation5 + $0x4] sm:$0xf] %v1079_v49  ;;  %1314 = vmatmul.mubr.bf16.vlgmr.msra.gmra.mxu0 %v1079_v49  ;;  %1355 = vmatmul.mubr.bf16.vlgmr.msra.gmra.mxu1 %v1079_v49  ;;  %v4602_v49 = vld [vmem:[%s4840_s3 + $0x48] ss:$16 sps:$4 sm:$0xff]  }
 0x247   :  { %1638 = vmatpush1.bf16.msra.mxu1 %v4177_v55  ;;  %1628 = vmatprep.mubr.bf16.mxu0 %v4864_v19  ;;  %v4414_v55 = vld [vmem:[%s4840_s3 + $0xe4] ss:$16 sps:$4 sm:$0xff]  }
 0x248   :  { %1639 = vmatprep.subr.bf16.mxu1 %v4183_v56  ;;  %1669 = vmatprep.mubr.bf16.mxu1 %v4864_v19  ;;  %v4419_v56 = vld [vmem:[%s4840_s3 + $0xe0] ss:$16 sps:$4 sm:$0xff]  }
 0x249   :  { %1596 = vmatprep.subr.bf16.mxu0 %v4414_v55 }
 0x24a   :  { %1597 = vmatpush1.bf16.msra.mxu0 %v4419_v56 }
 0x24b   :  { %1640 = vmatpush1.bf16.msra.mxu1 %v4192_v57  ;;  %v4426_v57 = vld [vmem:[%s4840_s3 + $0xc4] ss:$16 sps:$4 sm:$0xff]  }
 0x24c   :  { %1641 = vmatprep.subr.bf16.mxu1 %v4199_v58  ;;  %v4431_v58 = vld [vmem:[%s4840_s3 + $0xc0] ss:$16 sps:$4 sm:$0xff]   ;;  %1598 = vmatprep.subr.bf16.mxu0 %v4426_v57 }
 0x24e   :  { %1599 = vmatpush1.bf16.msra.mxu0 %v4431_v58 }
 0x24f   :  { %1642 = vmatpush1.bf16.msra.mxu1 %v4205_v59  ;;  %v4438_v59 = vld [vmem:[%s4840_s3 + $0xa4] ss:$16 sps:$4 sm:$0xff]  }
 0x250   :  { %1643 = vmatprep.subr.bf16.mxu1 %v4211_v60  ;;  %v4443_v60 = vld [vmem:[%s4840_s3 + $0xa0] ss:$16 sps:$4 sm:$0xff]   ;;  %1600 = vmatprep.subr.bf16.mxu0 %v4438_v59 }
 0x252   :  { %1601 = vmatpush1.bf16.msra.mxu0 %v4443_v60 }
 0x253   :  { %1644 = vmatpush1.bf16.msra.mxu1 %v4217_v61  ;;  %v4450_v61 = vld [vmem:[%s4840_s3 + $0x84] ss:$16 sps:$4 sm:$0xff]  }
 0x254   :  { %1645 = vmatprep.subr.bf16.mxu1 %v4224_v62  ;;  %v4455_v62 = vld [vmem:[%s4840_s3 + $0x80] ss:$16 sps:$4 sm:$0xff]   ;;  %1602 = vmatprep.subr.bf16.mxu0 %v4450_v61 }
 0x256   :  { %1603 = vmatpush1.bf16.msra.mxu0 %v4455_v62 }
 0x257   :  { %1646 = vmatpush1.bf16.msra.mxu1 %v4230_v63  ;;  %v4460_v63 = vld [vmem:[%s4840_s3 + $0x64] ss:$16 sps:$4 sm:$0xff]  }
 0x258   :  { %1647 = vmatprep.subr.bf16.mxu1 %v4236_v0  ;;  %v4467_v0 = vld [vmem:[%s4840_s3 + $0x60] ss:$16 sps:$4 sm:$0xff]   ;;  %1604 = vmatprep.subr.bf16.mxu0 %v4460_v63 }
 0x25a   :  { %1605 = vmatpush1.bf16.msra.mxu0 %v4467_v0 }
 0x25b   :  { %1648 = vmatpush1.bf16.msra.mxu1 %v4242_v2  ;;  %v4473_v2 = vld [vmem:[%s4840_s3 + $0x44] ss:$16 sps:$4 sm:$0xff]  }
 0x25c   :  { %1649 = vmatprep.subr.bf16.mxu1 %v4249_v3  ;;  %v4479_v3 = vld [vmem:[%s4840_s3 + $0x40] ss:$16 sps:$4 sm:$0xff]   ;;  %1606 = vmatprep.subr.bf16.mxu0 %v4473_v2 }
 0x25e   :  { %1607 = vmatpush1.bf16.msra.mxu0 %v4479_v3 }
 0x25f   :  { %1650 = vmatpush1.bf16.msra.mxu1 %v4255_v5  ;;  %v4485_v5 = vld [vmem:[%s4840_s3 + $0x24] ss:$16 sps:$4 sm:$0xff]  }
 0x260   :  { %1651 = vmatprep.subr.bf16.mxu1 %v4261_v6  ;;  %v4491_v6 = vld [vmem:[%s4840_s3 + $0x20] ss:$16 sps:$4 sm:$0xff]   ;;  %1608 = vmatprep.subr.bf16.mxu0 %v4485_v5 }
 0x262   :  { %1609 = vmatpush1.bf16.msra.mxu0 %v4491_v6 }
 0x263   :  { %1652 = vmatpush1.bf16.msra.mxu1 %v4267_v9  ;;  %v4497_v9 = vld [vmem:[%s4840_s3 + $0x4] ss:$16 sps:$4 sm:$0xff]  }
 0x264   :  { %1610 = vmatprep.subr.bf16.mxu0 %v4497_v9  ;;  %1952 = vmatprep.subr.bf16.mxu1 %v4537_v37 }
 0x266   :  { %1611 = vmatpush1.bf16.msra.mxu0 %v4503_v36 }
 0x267   :  { %1911 = vmatprep.subr.bf16.mxu0 %v4414_v55 }
 0x306   :  { %v1315_v51 = vpop.f32.mrf.mxu0  ;;  %v1356_v45 = vpop.f32.mrf.mxu1 }
 0x307   :  { %v1363_v53 = vadd.f32 %v1315_v51, %v4298_v40  ;;  %v1365_v14 = vadd.f32 %v1356_v45, %v4326_v39  ;;  %v4608_v51 = vld [vmem:[%s4840_s3 + $0x2c] ss:$16 sps:$4 sm:$0xff]   ;;  %v4614_v45 = vld [vmem:[%s4840_s3 + $0x28] ss:$16 sps:$4 sm:$0xff]  }
 0x308   :  { %v1317_v32 = vpop.f32.mrf.mxu0  ;;  %v1358_v1 = vpop.f32.mrf.mxu1 }
 0x309   :  { %v3322_v15 = vmul.f32 -1.442695, %v1363_v53  ;;  %v1364_v31 = vadd.f32 %v1317_v32, %v4300_v42  ;;  %v1366_v13 = vadd.f32 %v1358_v1, %v4328_v23  ;;  %v4620_v53 = vld [vmem:[%s4840_s3 + $0xc] ss:$16 sps:$4 sm:$0xff]   ;;  %v4626_v32 = vld [vmem:[%s4840_s3 + $0x8] ss:$16 sps:$4 sm:$0xff]  }
 0x30a   :  { %v1319_v35 = vpop.f32.mrf.mxu0  ;;  %v1360_v4 = vpop.f32.mrf.mxu1 }
 0x30b   :  { %3806 = vpow2.f32 %v3322_v15  ;;  %v3323_v7 = vmul.f32 -1.442695, %v1364_v31  ;;  %v3324_v17 = vmul.f32 -1.442695, %v1366_v13 }
 0x30c   :  { %v1320_v8 = vpop.f32.mrf.mxu0  ;;  %v1361_v11 = vpop.f32.mrf.mxu1 }
 0x30d   :  { %3808 = vpow2.f32 %v3323_v7 }
 0x30e   :  { %3810 = vtanh.f32 %v1365_v14 }
 0x30f   :  { %3812 = vpow2.f32 %v3324_v17 }
 0x318   :  { %v3807_v18 = vpop.eup %3806 }
 0x319   :  { %v1370_v21 = vadd.f32 1.0, %v3807_v18 }
 0x31a   :  { %v3809_v40 = vpop.eup %3808 }
 0x31b   :  { %3814 = vrcp.f32 %v1370_v21  ;;  %v1376_v22 = vadd.f32 1.0, %v3809_v40  ;;  %v3811_v42 = vpop.eup %3810  ;;  %v4865_v40 = vld [vmem:[#allocation14_spill] sm:$0xff] }
 0x31c   :  { %v3813_v25 = vpop.eup %3812 }
 0x31d   :  { %3816 = vrcp.f32 %v1376_v22  ;;  %v1383_v33 = vadd.f32 1.0, %v3813_v25 }
 0x31f   :  { %3818 = vrcp.f32 %v1383_v33 }
 0x328   :  { %v3815_v26 = vpop.eup %3814 }
 0x329   :  { %v1388_v29 = vmul.f32 %v3815_v26, %v3811_v42 }
 0x32a   :  { %v3817_v30 = vpop.eup %3816 }
 0x32b   :  { %v1387_v54 = vmul.f32 %v3817_v30, %v4391_v50  ;;  %v4578_v50 = vld [vmem:[%s4840_s3 + $0x88] ss:$16 sps:$4 sm:$0xff]  }
 0x32c   :  { %v3819_v39 = vpop.eup %3818 }
 0x32d   :  { %v4513_v23 = vadd.f32 %v1388_v29, %v1387_v54 }
 0x32f   :  { %3820 = vtanh.f32 %v4513_v23 }
 0x33c   :  { %v3821_v10 = vpop.eup %3820 }
 0x33d   :  { %v1391_v34 = vmul.f32 %v3821_v10, %v3819_v39 }
 0x33f   :  { %v1394_v48 = vpack.c.bf16 %v1391_v34, %v1391_v34 }
 0x341   :  { %1396 = vst [vmem:[#allocation5 + $0x8] sm:$0xf] %v1394_v48  ;;  %1629 = vmatmul.mubr.bf16.vlgmr.msra.gmra.mxu0 %v1394_v48  ;;  %1670 = vmatmul.mubr.bf16.vlgmr.msra.gmra.mxu1 %v1394_v48 }
 0x342   :  { %1912 = vmatpush1.bf16.msra.mxu0 %v4419_v56  ;;  %1943 = vmatprep.mubr.bf16.mxu0 %v4864_v19 }
 0x343   :  { %1913 = vmatprep.subr.bf16.mxu0 %v4426_v57  ;;  %1984 = vmatprep.mubr.bf16.mxu1 %v4864_v19 }
 0x344   :  { %1953 = vmatpush1.bf16.msra.mxu1 %v4542_v38 }
 0x345   :  { %1954 = vmatprep.subr.bf16.mxu1 %v4549_v28 }
 0x346   :  { %1914 = vmatpush1.bf16.msra.mxu0 %v4431_v58 }
 0x347   :  { %1915 = vmatprep.subr.bf16.mxu0 %v4438_v59 }
 0x348   :  { %1955 = vmatpush1.bf16.msra.mxu1 %v4554_v12 }
 0x349   :  { %1956 = vmatprep.subr.bf16.mxu1 %v4561_v16 }
 0x34a   :  { %1916 = vmatpush1.bf16.msra.mxu0 %v4443_v60 }
 0x34b   :  { %1917 = vmatprep.subr.bf16.mxu0 %v4450_v61 }
 0x34c   :  { %1957 = vmatpush1.bf16.msra.mxu1 %v4566_v24 }
 0x34d   :  { %1958 = vmatprep.subr.bf16.mxu1 %v4573_v43 }
 0x34e   :  { %1918 = vmatpush1.bf16.msra.mxu0 %v4455_v62 }
 0x34f   :  { %1919 = vmatprep.subr.bf16.mxu0 %v4460_v63 }
 0x350   :  { %1959 = vmatpush1.bf16.msra.mxu1 %v4578_v50 }
 0x351   :  { %1960 = vmatprep.subr.bf16.mxu1 %v4583_v20 }
 0x352   :  { %1920 = vmatpush1.bf16.msra.mxu0 %v4467_v0 }
 0x353   :  { %1921 = vmatprep.subr.bf16.mxu0 %v4473_v2 }
 0x354   :  { %1961 = vmatpush1.bf16.msra.mxu1 %v4590_v47 }
 0x355   :  { %1962 = vmatprep.subr.bf16.mxu1 %v4596_v41 }
 0x356   :  { %1922 = vmatpush1.bf16.msra.mxu0 %v4479_v3 }
 0x357   :  { %1923 = vmatprep.subr.bf16.mxu0 %v4485_v5 }
 0x358   :  { %1963 = vmatpush1.bf16.msra.mxu1 %v4602_v49 }
 0x359   :  { %1964 = vmatprep.subr.bf16.mxu1 %v4608_v51 }
 0x35a   :  { %1924 = vmatpush1.bf16.msra.mxu0 %v4491_v6 }
 0x35b   :  { %1925 = vmatprep.subr.bf16.mxu0 %v4497_v9 }
 0x35c   :  { %1965 = vmatpush1.bf16.msra.mxu1 %v4614_v45 }
 0x35d   :  { %1966 = vmatprep.subr.bf16.mxu1 %v4620_v53 }
 0x35e   :  { %1926 = vmatpush1.bf16.msra.mxu0 %v4503_v36 }
 0x35f   :  { %2226 = vmatprep.subr.bf16.mxu0 %v4414_v55 }
 0x360   :  { %1967 = vmatpush1.bf16.msra.mxu1 %v4626_v32 }
 0x361   :  { %2267 = vmatprep.subr.bf16.mxu1 %v4537_v37 }
 0x401   :  { %v1630_v1 = vpop.f32.mrf.mxu0  ;;  %v1671_v15 = vpop.f32.mrf.mxu1 }
 0x402   :  { %v1678_v31 = vadd.f32 %v1630_v1, %v4302_v44  ;;  %v1680_v22 = vadd.f32 %v1671_v15, %v4865_v40 }
 0x403   :  { %v1632_v35 = vpop.f32.mrf.mxu0  ;;  %v1673_v4 = vpop.f32.mrf.mxu1 }
 0x404   :  { %v3357_v7 = vmul.f32 -1.442695, %v1678_v31  ;;  %v1679_v8 = vadd.f32 %v1632_v35, %v4304_v46  ;;  %v1681_v21 = vadd.f32 %v1673_v4, %v4332_v27  ;;  %v4866_v4 = vld [vmem:[#allocation6_spill] sm:$0xff] }
 0x405   :  { %v1634_v11 = vpop.f32.mrf.mxu0  ;;  %v1675_v13 = vpop.f32.mrf.mxu1 }
 0x406   :  { %3822 = vpow2.f32 %v3357_v7  ;;  %v3358_v14 = vmul.f32 -1.442695, %v1679_v8  ;;  %v3359_v42 = vmul.f32 -1.442695, %v1681_v21 }
 0x407   :  { %v1635_v17 = vpop.f32.mrf.mxu0  ;;  %v1676_v18 = vpop.f32.mrf.mxu1 }
 0x408   :  { %3824 = vpow2.f32 %v3358_v14  ;;  %v4867_v14 = vld [vmem:[#allocation7_spill] sm:$0xff] }
 0x409   :  { %3826 = vtanh.f32 %v1680_v22 }
 0x40a   :  { %3828 = vpow2.f32 %v3359_v42 }
 0x413   :  { %v3823_v25 = vpop.eup %3822 }
 0x414   :  { %v1685_v26 = vadd.f32 1.0, %v3823_v25  ;;  %v4868_v25 = vld [vmem:[#allocation16_spill] sm:$0xff] }
 0x415   :  { %v3825_v44 = vpop.eup %3824 }
 0x416   :  { %3830 = vrcp.f32 %v1685_v26  ;;  %v1691_v29 = vadd.f32 1.0, %v3825_v44  ;;  %v3827_v46 = vpop.eup %3826  ;;  %v4869_v26 = vld [vmem:[#allocation15_spill] sm:$0xff] }
 0x417   :  { %v3829_v30 = vpop.eup %3828 }
 0x418   :  { %3832 = vrcp.f32 %v1691_v29  ;;  %v1698_v10 = vadd.f32 1.0, %v3829_v30 }
 0x41a   :  { %3834 = vrcp.f32 %v1698_v10 }
 0x423   :  { %v3831_v33 = vpop.eup %3830 }
 0x424   :  { %v1703_v54 = vmul.f32 %v3831_v33, %v3827_v46 }
 0x425   :  { %v3833_v39 = vpop.eup %3832 }
 0x426   :  { %v1702_v34 = vmul.f32 %v3833_v39, %v4513_v23 }
 0x427   :  { %v3835_v48 = vpop.eup %3834 }
 0x428   :  { %v4636_v27 = vadd.f32 %v1703_v54, %v1702_v34 }
 0x42a   :  { %3836 = vtanh.f32 %v4636_v27 }
 0x437   :  { %v3837_v1 = vpop.eup %3836 }
 0x438   :  { %v1706_v15 = vmul.f32 %v3837_v1, %v3835_v48 }
 0x43a   :  { %v1709_v31 = vpack.c.bf16 %v1706_v15, %v1706_v15 }
 0x43c   :  { %1711 = vst [vmem:[#allocation5 + $0xc] sm:$0xf] %v1709_v31  ;;  %1944 = vmatmul.mubr.bf16.vlgmr.msra.gmra.mxu0 %v1709_v31  ;;  %1985 = vmatmul.mubr.bf16.vlgmr.msra.gmra.mxu1 %v1709_v31 }
 0x43d   :  { %2227 = vmatpush1.bf16.msra.mxu0 %v4419_v56  ;;  %2268 = vmatpush1.bf16.msra.mxu1 %v4542_v38 }
 0x43e   :  { %2228 = vmatprep.subr.bf16.mxu0 %v4426_v57  ;;  %2269 = vmatprep.subr.bf16.mxu1 %v4549_v28 }
 0x43f   :  { %2258 = vmatprep.mubr.bf16.mxu0 %v4864_v19  ;;  %2299 = vmatprep.mubr.bf16.mxu1 %v4864_v19 }
 0x441   :  { %2229 = vmatpush1.bf16.msra.mxu0 %v4431_v58  ;;  %2270 = vmatpush1.bf16.msra.mxu1 %v4554_v12 }
 0x442   :  { %2230 = vmatprep.subr.bf16.mxu0 %v4438_v59  ;;  %2271 = vmatprep.subr.bf16.mxu1 %v4561_v16 }
 0x445   :  { %2231 = vmatpush1.bf16.msra.mxu0 %v4443_v60  ;;  %2272 = vmatpush1.bf16.msra.mxu1 %v4566_v24 }
 0x446   :  { %2232 = vmatprep.subr.bf16.mxu0 %v4450_v61  ;;  %2273 = vmatprep.subr.bf16.mxu1 %v4573_v43 }
 0x449   :  { %2233 = vmatpush1.bf16.msra.mxu0 %v4455_v62  ;;  %2274 = vmatpush1.bf16.msra.mxu1 %v4578_v50 }
 0x44a   :  { %2234 = vmatprep.subr.bf16.mxu0 %v4460_v63  ;;  %2275 = vmatprep.subr.bf16.mxu1 %v4583_v20 }
 0x44d   :  { %2235 = vmatpush1.bf16.msra.mxu0 %v4467_v0  ;;  %2276 = vmatpush1.bf16.msra.mxu1 %v4590_v47 }
 0x44e   :  { %2236 = vmatprep.subr.bf16.mxu0 %v4473_v2  ;;  %2277 = vmatprep.subr.bf16.mxu1 %v4596_v41 }
 0x451   :  { %2237 = vmatpush1.bf16.msra.mxu0 %v4479_v3  ;;  %2278 = vmatpush1.bf16.msra.mxu1 %v4602_v49 }
 0x452   :  { %2238 = vmatprep.subr.bf16.mxu0 %v4485_v5  ;;  %2279 = vmatprep.subr.bf16.mxu1 %v4608_v51 }
 0x455   :  { %2239 = vmatpush1.bf16.msra.mxu0 %v4491_v6  ;;  %2280 = vmatpush1.bf16.msra.mxu1 %v4614_v45 }
 0x456   :  { %2240 = vmatprep.subr.bf16.mxu0 %v4497_v9  ;;  %2281 = vmatprep.subr.bf16.mxu1 %v4620_v53 }
 0x459   :  { %2241 = vmatpush1.bf16.msra.mxu0 %v4503_v36  ;;  %2282 = vmatpush1.bf16.msra.mxu1 %v4626_v32 }
 0x45a   :  { %2541 = vmatprep.subr.bf16.mxu0 %v4414_v55  ;;  %2582 = vmatprep.subr.bf16.mxu1 %v4537_v37 }
 0x4fc   :  { %v1945_v23 = vpop.f32.mrf.mxu0  ;;  %v1986_v35 = vpop.f32.mrf.mxu1 }
 0x4fd   :  { %v1993_v7 = vadd.f32 %v1945_v23, %v4866_v4  ;;  %v1995_v44 = vadd.f32 %v1986_v35, %v4869_v26 }
 0x4fe   :  { %v1947_v8 = vpop.f32.mrf.mxu0  ;;  %v1988_v11 = vpop.f32.mrf.mxu1 }
 0x4ff   :  { %v3392_v13 = vmul.f32 -1.442695, %v1993_v7  ;;  %v1994_v17 = vadd.f32 %v1947_v8, %v4867_v14  ;;  %v1996_v55 = vadd.f32 %v1988_v11, %v4868_v25  ;;  %v4873_v11 = vld [vmem:[#allocation17_spill] sm:$0xff] }
 0x500   :  { %v1949_v18 = vpop.f32.mrf.mxu0  ;;  %v1990_v21 = vpop.f32.mrf.mxu1 }
 0x501   :  { %3838 = vpow2.f32 %v3392_v13  ;;  %v3393_v40 = vmul.f32 -1.442695, %v1994_v17  ;;  %v3394_v29 = vmul.f32 -1.442695, %v1996_v55 }
 0x502   :  { %v1950_v22 = vpop.f32.mrf.mxu0  ;;  %v1991_v42 = vpop.f32.mrf.mxu1 }
 0x503   :  { %3840 = vpow2.f32 %v3393_v40 }
 0x504   :  { %3842 = vtanh.f32 %v1995_v44 }
 0x505   :  { %3844 = vpow2.f32 %v3394_v29 }
 0x50e   :  { %v3839_v46 = vpop.eup %3838 }
 0x50f   :  { %v2000_v30 = vadd.f32 1.0, %v3839_v46 }
 0x510   :  { %v3841_v33 = vpop.eup %3840 }
 0x511   :  { %3846 = vrcp.f32 %v2000_v30  ;;  %v2006_v54 = vadd.f32 1.0, %v3841_v33  ;;  %v3843_v39 = vpop.eup %3842 }
 0x512   :  { %v3845_v10 = vpop.eup %3844 }
 0x513   :  { %3848 = vrcp.f32 %v2006_v54  ;;  %v2013_v15 = vadd.f32 1.0, %v3845_v10 }
 0x515   :  { %3850 = vrcp.f32 %v2013_v15 }
 0x51e   :  { %v3847_v34 = vpop.eup %3846 }
 0x51f   :  { %v2018_v48 = vmul.f32 %v3847_v34, %v3843_v39  ;;  %v3762_v39 = vld [vmem:[%s4843_s4 + $0x38] sm:$0xff]  }
 0x520   :  { %v3849_v1 = vpop.eup %3848 }
 0x521   :  { %v2017_v31 = vmul.f32 %v3849_v1, %v4636_v27 }
 0x522   :  { %v3851_v35 = vpop.eup %3850 }
 0x523   :  { %v4678_v23 = vadd.f32 %v2018_v48, %v2017_v31  ;;  %v4874_v48 = vld [vmem:[#allocation10_spill] sm:$0xff] }
 0x525   :  { %3852 = vtanh.f32 %v4678_v23 }
 0x532   :  { %v3853_v4 = vpop.eup %3852 }
 0x533   :  { %v2021_v7 = vmul.f32 %v3853_v4, %v3851_v35  ;;  %v4875_v35 = vld [vmem:[#allocation11_spill] sm:$0xff] }
 0x535   :  { %v2024_v8 = vpack.c.bf16 %v2021_v7, %v2021_v7 }
 0x537   :  { %2026 = vst [vmem:[#allocation5 + $0x10] sm:$0xf] %v2024_v8  ;;  %2259 = vmatmul.mubr.bf16.vlgmr.msra.gmra.mxu0 %v2024_v8  ;;  %2300 = vmatmul.mubr.bf16.vlgmr.msra.gmra.mxu1 %v2024_v8 }
 0x538   :  { %2542 = vmatpush1.bf16.msra.mxu0 %v4419_v56  ;;  %2583 = vmatpush1.bf16.msra.mxu1 %v4542_v38 }
 0x539   :  { %2543 = vmatprep.subr.bf16.mxu0 %v4426_v57  ;;  %2584 = vmatprep.subr.bf16.mxu1 %v4549_v28 }
 0x53a   :  { %2573 = vmatprep.mubr.bf16.mxu0 %v4864_v19  ;;  %2614 = vmatprep.mubr.bf16.mxu1 %v4864_v19 }
 0x53c   :  { %2544 = vmatpush1.bf16.msra.mxu0 %v4431_v58  ;;  %2585 = vmatpush1.bf16.msra.mxu1 %v4554_v12  ;;  %v4870_v58 = vld [vmem:[#allocation8_spill] sm:$0xff] }
 0x53d   :  { %2545 = vmatprep.subr.bf16.mxu0 %v4438_v59  ;;  %2586 = vmatprep.subr.bf16.mxu1 %v4561_v16 }
 0x540   :  { %2546 = vmatpush1.bf16.msra.mxu0 %v4443_v60  ;;  %2587 = vmatpush1.bf16.msra.mxu1 %v4566_v24 }
 0x541   :  { %2547 = vmatprep.subr.bf16.mxu0 %v4450_v61  ;;  %2588 = vmatprep.subr.bf16.mxu1 %v4573_v43 }
 0x544   :  { %2548 = vmatpush1.bf16.msra.mxu0 %v4455_v62  ;;  %2589 = vmatpush1.bf16.msra.mxu1 %v4578_v50 }
 0x545   :  { %2549 = vmatprep.subr.bf16.mxu0 %v4460_v63  ;;  %2590 = vmatprep.subr.bf16.mxu1 %v4583_v20  ;;  %v4871_v63 = vld [vmem:[#allocation9_spill] sm:$0xff] }
 0x548   :  { %2550 = vmatpush1.bf16.msra.mxu0 %v4467_v0  ;;  %2591 = vmatpush1.bf16.msra.mxu1 %v4590_v47 }
 0x549   :  { %2551 = vmatprep.subr.bf16.mxu0 %v4473_v2  ;;  %2592 = vmatprep.subr.bf16.mxu1 %v4596_v41 }
 0x54c   :  { %2552 = vmatpush1.bf16.msra.mxu0 %v4479_v3  ;;  %2593 = vmatpush1.bf16.msra.mxu1 %v4602_v49 }
 0x54d   :  { %2553 = vmatprep.subr.bf16.mxu0 %v4485_v5  ;;  %2594 = vmatprep.subr.bf16.mxu1 %v4608_v51 }
 0x550   :  { %2554 = vmatpush1.bf16.msra.mxu0 %v4491_v6  ;;  %2595 = vmatpush1.bf16.msra.mxu1 %v4614_v45 }
 0x551   :  { %2555 = vmatprep.subr.bf16.mxu0 %v4497_v9  ;;  %2596 = vmatprep.subr.bf16.mxu1 %v4620_v53 }
 0x554   :  { %2556 = vmatpush1.bf16.msra.mxu0 %v4503_v36  ;;  %2597 = vmatpush1.bf16.msra.mxu1 %v4626_v32  ;;  %v4872_v36 = vld [vmem:[#allocation18_spill] sm:$0xff] }
 0x555   :  { %2897 = vmatprep.subr.bf16.mxu1 %v4537_v37 }
 0x5f7   :  { %v2260_v56 = vpop.f32.mrf.mxu0  ;;  %v2301_v57 = vpop.f32.mrf.mxu1 }
 0x5f8   :  { %v2308_v59 = vadd.f32 %v2260_v56, %v4870_v58  ;;  %v2310_v37 = vadd.f32 %v2301_v57, %v4873_v11 }
 0x5f9   :  { %v2262_v60 = vpop.f32.mrf.mxu0  ;;  %v2303_v61 = vpop.f32.mrf.mxu1 }
 0x5fa   :  { %v3427_v62 = vmul.f32 -1.442695, %v2308_v59  ;;  %v2309_v0 = vadd.f32 %v2262_v60, %v4871_v63  ;;  %v2311_v27 = vadd.f32 %v2303_v61, %v4872_v36  ;;  %v4876_v59 = vld [vmem:[#allocation20_spill] sm:$0xff]  ;;  %v4877_v61 = vld [vmem:[#allocation19_spill] sm:$0xff] }
 0x5fb   :  { %v2264_v2 = vpop.f32.mrf.mxu0  ;;  %v2305_v3 = vpop.f32.mrf.mxu1 }
 0x5fc   :  { %3854 = vpow2.f32 %v3427_v62  ;;  %v3428_v5 = vmul.f32 -1.442695, %v2309_v0  ;;  %v3429_v13 = vmul.f32 -1.442695, %v2311_v27 }
 0x5fd   :  { %v2265_v6 = vpop.f32.mrf.mxu0  ;;  %v2306_v9 = vpop.f32.mrf.mxu1 }
 0x5fe   :  { %3856 = vpow2.f32 %v3428_v5 }
 0x5ff   :  { %3858 = vtanh.f32 %v2310_v37 }
 0x600   :  { %3860 = vpow2.f32 %v3429_v13 }
 0x609   :  { %v3855_v14 = vpop.eup %3854 }
 0x60a   :  { %v2315_v17 = vadd.f32 1.0, %v3855_v14 }
 0x60b   :  { %v3857_v18 = vpop.eup %3856 }
 0x60c   :  { %3862 = vrcp.f32 %v2315_v17  ;;  %v2321_v21 = vadd.f32 1.0, %v3857_v18  ;;  %v3859_v40 = vpop.eup %3858 }
 0x60d   :  { %v3861_v22 = vpop.eup %3860 }
 0x60e   :  { %3864 = vrcp.f32 %v2321_v21  ;;  %v2328_v26 = vadd.f32 1.0, %v3861_v22  ;;  %v3764_v22 = vld [vmem:[%s4843_s4 + $0x30] sm:$0xff]  }
 0x610   :  { %3866 = vrcp.f32 %v2328_v26  ;;  %v3767_v26 = vld [vmem:[%s4843_s4 + $0x18] sm:$0xff]  }
 0x619   :  { %v3863_v42 = vpop.eup %3862 }
 0x61a   :  { %v2333_v25 = vmul.f32 %v3863_v42, %v3859_v40  ;;  %v3763_v42 = vld [vmem:[#allocation5] sm:$0xff]  }
 0x61b   :  { %v3865_v55 = vpop.eup %3864 }
 0x61c   :  { %v2332_v44 = vmul.f32 %v3865_v55, %v4678_v23  ;;  %v3766_v55 = vld [vmem:[%s4843_s4 + $0x20] sm:$0xff]  }
 0x61d   :  { %v3867_v46 = vpop.eup %3866 }
 0x61e   :  { %v4719_v29 = vadd.f32 %v2333_v25, %v2332_v44  ;;  %v3765_v25 = vld [vmem:[%s4843_s4 + $0x28] sm:$0xff]   ;;  %v3768_v44 = vld [vmem:[%s4843_s4 + $0x10] sm:$0xff]  }
 0x620   :  { %3868 = vtanh.f32 %v4719_v29 }
 0x62d   :  { %v3869_v30 = vpop.eup %3868 }
 0x62e   :  { %v2336_v33 = vmul.f32 %v3869_v30, %v3867_v46  ;;  %v3770_v46 = vld [vmem:[%s4843_s4] sm:$0xff]   ;;  %v3771_v30 = vld [vmem:[#allocation5 + $0x8] sm:$0xff]  }
 0x630   :  { %v2339_v54 = vpack.c.bf16 %v2336_v33, %v2336_v33 }
 0x632   :  { %2341 = vst [vmem:[#allocation5 + $0x14] sm:$0xf] %v2339_v54  ;;  %2574 = vmatmul.mubr.bf16.vlgmr.msra.gmra.mxu0 %v2339_v54  ;;  %2615 = vmatmul.mubr.bf16.vlgmr.msra.gmra.mxu1 %v2339_v54 }
 0x633   :  { %2898 = vmatpush1.bf16.msra.mxu1 %v4542_v38  ;;  %2888 = vmatprep.mubr.bf16.mxu0 %v4864_v19  ;;  %v3738_v38 = vld [vmem:[%s4840_s3 + $0xe0] ss:$16 sps:$4 sm:$0xff]  }
 0x634   :  { %2899 = vmatprep.subr.bf16.mxu1 %v4549_v28  ;;  %2929 = vmatprep.mubr.bf16.mxu1 %v4864_v19  ;;  %v3740_v19 = vld [vmem:[%s4840_s3 + $0xe4] ss:$16 sps:$4 sm:$0xff]  }
 0x635   :  { %2856 = vmatprep.subr.bf16.mxu0 %v3740_v19  ;;  %v3743_v28 = vld [vmem:[%s4840_s3 + $0xc4] ss:$16 sps:$4 sm:$0xff]  }
 0x636   :  { %2857 = vmatpush1.bf16.msra.mxu0 %v3738_v38  ;;  %v4878_v38 = vld [vmem:[#allocation12_spill] sm:$0xff] }
 0x637   :  { %2900 = vmatpush1.bf16.msra.mxu1 %v4554_v12  ;;  %v3741_v12 = vld [vmem:[%s4840_s3 + $0xc0] ss:$16 sps:$4 sm:$0xff]   ;;  %2858 = vmatprep.subr.bf16.mxu0 %v3743_v28 }
 0x638   :  { %2901 = vmatprep.subr.bf16.mxu1 %v4561_v16  ;;  %v3746_v16 = vld [vmem:[%s4840_s3 + $0xa4] ss:$16 sps:$4 sm:$0xff]  }
 0x639   :  { %v3772_v33 = vld [vmem:[#allocation5 + $0x10] sm:$0xff]  }
 0x63a   :  { %2859 = vmatpush1.bf16.msra.mxu0 %v3741_v12 }
 0x63b   :  { %2902 = vmatpush1.bf16.msra.mxu1 %v4566_v24  ;;  %v3744_v24 = vld [vmem:[%s4840_s3 + $0xa0] ss:$16 sps:$4 sm:$0xff]   ;;  %2860 = vmatprep.subr.bf16.mxu0 %v3746_v16 }
 0x63c   :  { %2903 = vmatprep.subr.bf16.mxu1 %v4573_v43  ;;  %v3749_v43 = vld [vmem:[%s4840_s3 + $0x84] ss:$16 sps:$4 sm:$0xff]  }
 0x63e   :  { %2861 = vmatpush1.bf16.msra.mxu0 %v3744_v24 }
 0x63f   :  { %2904 = vmatpush1.bf16.msra.mxu1 %v4578_v50  ;;  %v3747_v50 = vld [vmem:[%s4840_s3 + $0x80] ss:$16 sps:$4 sm:$0xff]   ;;  %2862 = vmatprep.subr.bf16.mxu0 %v3749_v43  ;;  %v4879_v43 = vld [vmem:[#allocation13_spill] sm:$0xff] }
 0x640   :  { %2905 = vmatprep.subr.bf16.mxu1 %v4583_v20  ;;  %v3752_v20 = vld [vmem:[%s4840_s3 + $0x64] ss:$16 sps:$4 sm:$0xff]  }
 0x642   :  { %2863 = vmatpush1.bf16.msra.mxu0 %v3747_v50 }
 0x643   :  { %2906 = vmatpush1.bf16.msra.mxu1 %v4590_v47  ;;  %v3750_v47 = vld [vmem:[%s4840_s3 + $0x60] ss:$16 sps:$4 sm:$0xff]   ;;  %2864 = vmatprep.subr.bf16.mxu0 %v3752_v20 }
 0x644   :  { %2907 = vmatprep.subr.bf16.mxu1 %v4596_v41  ;;  %v3755_v41 = vld [vmem:[%s4840_s3 + $0x44] ss:$16 sps:$4 sm:$0xff]  }
 0x646   :  { %2865 = vmatpush1.bf16.msra.mxu0 %v3750_v47 }
 0x647   :  { %2908 = vmatpush1.bf16.msra.mxu1 %v4602_v49  ;;  %v3753_v49 = vld [vmem:[%s4840_s3 + $0x40] ss:$16 sps:$4 sm:$0xff]   ;;  %2866 = vmatprep.subr.bf16.mxu0 %v3755_v41 }
 0x648   :  { %2909 = vmatprep.subr.bf16.mxu1 %v4608_v51  ;;  %v3758_v51 = vld [vmem:[%s4840_s3 + $0x24] ss:$16 sps:$4 sm:$0xff]  }
 0x64a   :  { %2867 = vmatpush1.bf16.msra.mxu0 %v3753_v49 }
 0x64b   :  { %2910 = vmatpush1.bf16.msra.mxu1 %v4614_v45  ;;  %v3756_v45 = vld [vmem:[%s4840_s3 + $0x20] ss:$16 sps:$4 sm:$0xff]   ;;  %2868 = vmatprep.subr.bf16.mxu0 %v3758_v51 }
 0x64c   :  { %2911 = vmatprep.subr.bf16.mxu1 %v4620_v53  ;;  %v3761_v53 = vld [vmem:[%s4840_s3 + $0x4] ss:$16 sps:$4 sm:$0xff]  }
 0x64e   :  { %2869 = vmatpush1.bf16.msra.mxu0 %v3756_v45 }
 0x64f   :  { %2912 = vmatpush1.bf16.msra.mxu1 %v4626_v32  ;;  %v3759_v32 = vld [vmem:[%s4840_s3] ss:$16 sps:$4 sm:$0xff]   ;;  %2870 = vmatprep.subr.bf16.mxu0 %v3761_v53  ;;  %v4880_v53 = vld [vmem:[#allocation21_spill] sm:$0xff] }
 0x652   :  { %2871 = vmatpush1.bf16.msra.mxu0 %v3759_v32 }
 0x653   :  { %3564 = vmatprep.subr.bf16.mxu0 %v3762_v39 }
 0x6f2   :  { %v2575_v10 = vpop.f32.mrf.mxu0  ;;  %v2616_v34 = vpop.f32.mrf.mxu1 }
 0x6f3   :  { %v2623_v1 = vadd.f32 %v2575_v10, %v4874_v48  ;;  %v2625_v62 = vadd.f32 %v2616_v34, %v4877_v61 }
 0x6f4   :  { %v2577_v15 = vpop.f32.mrf.mxu0  ;;  %v2618_v31 = vpop.f32.mrf.mxu1 }
 0x6f5   :  { %v3462_v23 = vmul.f32 -1.442695, %v2623_v1  ;;  %v2624_v4 = vadd.f32 %v2577_v15, %v4875_v35  ;;  %v2626_v60 = vadd.f32 %v2618_v31, %v4876_v59 }
 0x6f6   :  { %v2579_v7 = vpop.f32.mrf.mxu0  ;;  %v2620_v8 = vpop.f32.mrf.mxu1 }
 0x6f7   :  { %3870 = vpow2.f32 %v3462_v23  ;;  %v3463_v56 = vmul.f32 -1.442695, %v2624_v4  ;;  %v3464_v63 = vmul.f32 -1.442695, %v2626_v60  ;;  %v3500_v4 = vld [vmem:[%s4844_s5] ss:$0 sm:$0xff] }
 0x6f8   :  { %v2580_v57 = vpop.f32.mrf.mxu0  ;;  %v2621_v58 = vpop.f32.mrf.mxu1 }
 0x6f9   :  { %3872 = vpow2.f32 %v3463_v56 }
 0x6fa   :  { %3874 = vtanh.f32 %v2625_v62 }
 0x6fb   :  { %3876 = vpow2.f32 %v3464_v63 }
 0x704   :  { %v3871_v0 = vpop.eup %3870 }
 0x705   :  { %v2630_v2 = vadd.f32 1.0, %v3871_v0 }
 0x706   :  { %v3873_v3 = vpop.eup %3872 }
 0x707   :  { %3878 = vrcp.f32 %v2630_v2  ;;  %v2636_v5 = vadd.f32 1.0, %v3873_v3  ;;  %v3875_v6 = vpop.eup %3874 }
 0x708   :  { %v3877_v9 = vpop.eup %3876 }
 0x709   :  { %3880 = vrcp.f32 %v2636_v5  ;;  %v2643_v37 = vadd.f32 1.0, %v3877_v9 }
 0x70b   :  { %3882 = vrcp.f32 %v2643_v37 }
 0x714   :  { %v3879_v36 = vpop.eup %3878 }
 0x715   :  { %v2648_v27 = vmul.f32 %v3879_v36, %v3875_v6 }
 0x716   :  { %v3881_v11 = vpop.eup %3880 }
 0x717   :  { %v2647_v13 = vmul.f32 %v3881_v11, %v4719_v29  ;;  %v3769_v29 = vld [vmem:[%s4843_s4 + $0x8] sm:$0xff]  }
 0x718   :  { %v3883_v17 = vpop.eup %3882 }
 0x719   :  { %v4795_v14 = vadd.f32 %v2648_v27, %v2647_v13 }
 0x71b   :  { %3884 = vtanh.f32 %v4795_v14 }
 0x728   :  { %v3885_v18 = vpop.eup %3884 }
 0x729   :  { %v2651_v21 = vmul.f32 %v3885_v18, %v3883_v17 }
 0x72b   :  { %v2654_v40 = vpack.c.bf16 %v2651_v21, %v2651_v21 }
 0x72d   :  { %2656 = vst [vmem:[#allocation5 + $0x18] sm:$0xf] %v2654_v40  ;;  %2889 = vmatmul.mubr.bf16.vlgmr.msra.gmra.mxu0 %v2654_v40  ;;  %2930 = vmatmul.mubr.bf16.vlgmr.msra.gmra.mxu1 %v2654_v40 }
 0x72e   :  { %3565 = vmatpush3.bf16.msra.mxu0 %v3762_v39  ;;  %3580 = vmatprep.mubr.bf16.mxu0 %v3763_v42 }
 0x72f   :  { %3566 = vmatprep.subr.bf16.mxu0 %v3764_v22 }
 0x732   :  { %3567 = vmatpush3.bf16.msra.mxu0 %v3764_v22 }
 0x733   :  { %3568 = vmatprep.subr.bf16.mxu0 %v3765_v25 }
 0x736   :  { %3569 = vmatpush3.bf16.msra.mxu0 %v3765_v25 }
 0x737   :  { %3570 = vmatprep.subr.bf16.mxu0 %v3766_v55 }
 0x73a   :  { %3571 = vmatpush3.bf16.msra.mxu0 %v3766_v55 }
 0x73b   :  { %3572 = vmatprep.subr.bf16.mxu0 %v3767_v26 }
 0x73e   :  { %3573 = vmatpush3.bf16.msra.mxu0 %v3767_v26 }
 0x73f   :  { %3574 = vmatprep.subr.bf16.mxu0 %v3768_v44 }
 0x742   :  { %3575 = vmatpush3.bf16.msra.mxu0 %v3768_v44 }
 0x743   :  { %3576 = vmatprep.subr.bf16.mxu0 %v3769_v29 }
 0x746   :  { %3577 = vmatpush3.bf16.msra.mxu0 %v3769_v29 }
 0x747   :  { %3578 = vmatprep.subr.bf16.mxu0 %v3770_v46 }
 0x74a   :  { %3579 = vmatpush3.bf16.msra.mxu0 %v3770_v46 }
 0x74d   :  { %3581 = vmatmul.mubr.bf16.vlgmr.msra.gmra.mxu0 %v3771_v30 }
 0x74e   :  { %3584 = vmatprep.mubr.bf16.mxu0 %v3772_v33 }
 0x7ed   :  { %v2890_v54 = vpop.f32.mrf.mxu0  ;;  %v2931_v19 = vpop.f32.mrf.mxu1 }
 0x7ee   :  { %v2938_v28 = vadd.f32 %v2890_v54, %v4878_v38  ;;  %v2940_v32 = vadd.f32 %v2931_v19, %v4880_v53 }
 0x7ef   :  { %v2892_v12 = vpop.f32.mrf.mxu0  ;;  %v2933_v16 = vpop.f32.mrf.mxu1 }
 0x7f0   :  { %v3497_v24 = vmul.f32 -1.442695, %v2938_v28  ;;  %v2939_v50 = vadd.f32 %v2892_v12, %v4879_v43  ;;  %v2941_v45 = vadd.f32 %v2933_v16, %v4348_v52 }
 0x7f1   :  { %v2894_v20 = vpop.f32.mrf.mxu0  ;;  %v2935_v47 = vpop.f32.mrf.mxu1 }
 0x7f2   :  { %3886 = vpow2.f32 %v3497_v24  ;;  %v3498_v41 = vmul.f32 -1.442695, %v2939_v50  ;;  %v3499_v39 = vmul.f32 -1.442695, %v2941_v45 }
 0x7f3   :  { %v2895_v49 = vpop.f32.mrf.mxu0  ;;  %v2936_v51 = vpop.f32.mrf.mxu1 }
 0x7f4   :  { %3888 = vpow2.f32 %v3498_v41 }
 0x7f5   :  { %3890 = vtanh.f32 %v2940_v32 }
 0x7f6   :  { %3892 = vpow2.f32 %v3499_v39 }
 0x7ff   :  { %v3887_v10 = vpop.eup %3886 }
 0x800   :  { %v2945_v34 = vadd.f32 1.0, %v3887_v10 }
 0x801   :  { %v3889_v48 = vpop.eup %3888 }
 0x802   :  { %3894 = vrcp.f32 %v2945_v34  ;;  %v2951_v1 = vadd.f32 1.0, %v3889_v48  ;;  %v3891_v15 = vpop.eup %3890 }
 0x803   :  { %v3893_v23 = vpop.eup %3892 }
 0x804   :  { %3896 = vrcp.f32 %v2951_v1  ;;  %v2958_v56 = vadd.f32 1.0, %v3893_v23 }
 0x806   :  { %3898 = vrcp.f32 %v2958_v56 }
 0x80d   :  { %v3582_v31 = vpop.f32.mrf.mxu0 }
 0x80e   :  { %v3118_v59 = vadd.f32 %v3582_v31, %v3500_v4 }
 0x80f   :  { %v3895_v35 = vpop.eup %3894  ;;  %v3109_v52 = vpop.f32.mrf.mxu0 }
 0x810   :  { %v2963_v7 = vmul.f32 %v3895_v35, %v3891_v15  ;;  %v3110_v63 = vadd.f32 %v3500_v4, %v3109_v52 }
 0x811   :  { %v3897_v8 = vpop.eup %3896  ;;  %v3583_v57 = vpop.f32.mrf.mxu0 }
 0x812   :  { %v2962_v58 = vmul.f32 %v3897_v8, %v4795_v14  ;;  %v3121_v60 = vadd.f32 %v3583_v57, %v3500_v4 }
 0x813   :  { %v3112_v61 = vpop.f32.mrf.mxu0  ;;  %v3899_v5 = vpop.eup %3898 }
 0x814   :  { %v2964_v62 = vadd.f32 %v2963_v7, %v2962_v58  ;;  %v3537_v0 = vpack.c.bf16 %v3121_v60, %v3118_v59  ;;  %v3113_v2 = vadd.f32 %v3500_v4, %v3112_v61 }
 0x816   :  { %3900 = vtanh.f32 %v2964_v62  ;;  %3549 = vst [vmem:[%s4845_s6 + $0x8] sm:$0xff] %v3537_v0   ;;  %v3532_v3 = vpack.c.bf16 %v3113_v2, %v3110_v63 }
 0x818   :  { %3533 = vst [vmem:[%s4845_s6] sm:$0xff] %v3532_v3  }
 0x823   :  { %v3901_v6 = vpop.eup %3900 }
 0x824   :  { %v2966_v9 = vmul.f32 %v3901_v6, %v3899_v5 }
 0x826   :  { %v2969_v36 = vpack.c.bf16 %v2966_v9, %v2966_v9 }
 0x828   :  { %2971 = vst [vmem:[#allocation5 + $0x1c] sm:$0xf] %v2969_v36 }
 0x82f   :  { %v3773_v27 = vld [vmem:[#allocation5 + $0x18] sm:$0xff]  }
 0x830   :  { %3585 = vmatmul.mubr.bf16.gmra.mxu0 %v3773_v27 }
 0x8f0   :  { %v3586_v11 = vpop.f32.mrf.mxu0 }
 0x8f1   :  { %v3134_v14 = vadd.f32 %v3586_v11, %v3500_v4 }
 0x8f2   :  { %v3125_v37 = vpop.f32.mrf.mxu0 }
 0x8f3   :  { %v3126_v21 = vadd.f32 %v3500_v4, %v3125_v37 }
 0x8f4   :  { %v3587_v13 = vpop.f32.mrf.mxu0 }
 0x8f5   :  { %v3137_v17 = vadd.f32 %v3587_v13, %v3500_v4 }
 0x8f6   :  { %v3128_v18 = vpop.f32.mrf.mxu0 }
 0x8f7   :  { %v3547_v40 = vpack.c.bf16 %v3137_v17, %v3134_v14  ;;  %v3129_v22 = vadd.f32 %v3500_v4, %v3128_v18 }
 0x8f9   :  { %3551 = vst [vmem:[%s4845_s6 + $0x18] sm:$0xff] %v3547_v40   ;;  %v3542_v42 = vpack.c.bf16 %v3129_v22, %v3126_v21 }
 0x8fb   :  { %3550 = vst [vmem:[%s4845_s6 + $0x10] sm:$0xff] %v3542_v42  }

</bundles_post_ra>
